<compile_context>
chip_gen: v6e
topology: v6e:2x2x1
jax: 0.10.0
libtpu: 0.0.40
codegen_flags: <defaults>
</compile_context>

<pallas_src>
import numpy as np

import jax
import jax.numpy as jnp
from jax import lax
from jax.experimental import pallas as pl
from jax.experimental.pallas import tpu as pltpu


def _round_up(v, m):
    return ((v + m - 1) // m) * m


# ----------------------------------------------------------------------------
# Fused Pallas kernel (all conv layers + optional bilinear upsample)
# ----------------------------------------------------------------------------
def _make_fused_kernel(*, n_layers, kk, shifts, relu, has_upsample):
    """Build the fused _ConvBlock kernel.

    Ref order: x, masks, (w0, b0), (w1, b1), ..., [Mt], out.
      x     : (Cin0_pad, HW)          activation, channels on sublanes
      masks : (K*K, 1, HW)            per-tap zero-padding masks
      w_l   : (Cout_pad, K*K*Cin_pad) packed conv weights
      b_l   : (Cout_pad, 1)           bias
      Mt    : (HW, Ho*Wo)             kron(A_h, A_w)^T (only if upsample)
      out   : (Cfinal_pad, S_out)     lane-dense output tile
    """

    def kernel(*refs):
        x_ref, mask_ref = refs[0], refs[1]
        w_refs = [refs[2 + 2 * l] for l in range(n_layers)]
        b_refs = [refs[3 + 2 * l] for l in range(n_layers)]
        mt_ref = refs[2 + 2 * n_layers] if has_upsample else None
        o_ref = refs[-1]

        # Hoist the (1, HW) tap masks once (reused by every layer).
        mask_rows = [mask_ref[t] for t in range(kk)]

        act = x_ref[...]                                   # (Cin_pad, HW) f32
        for l in range(n_layers):
            # In-kernel im2col: K*K lane-rotated + masked copies of the
            # activation, concatenated on the sublane axis.
            pieces = []
            for t in range(kk):
                sh = shifts[t]
                shifted = act if sh == 0 else pltpu.roll(act, sh, axis=1)
                pieces.append(shifted * mask_rows[t])
            patches = jnp.concatenate(pieces, axis=0)      # (K*K*Cin_pad, HW)

            # Single MXU contraction per layer, lane-dense (Cout_pad, HW) out.
            act = jnp.dot(w_refs[l][...], patches,
                          preferred_element_type=jnp.float32)
            act = act + b_refs[l][...]
            if relu[l]:
                act = jnp.maximum(act, 0.0)

        if has_upsample:
            # Bilinear upsample as one lane-dense matmul: (C, HW) @ (HW, HoWo).
            act = jnp.dot(act, mt_ref[...],
                          preferred_element_type=jnp.float32)

        o_ref[...] = act.astype(o_ref.dtype)

    return kernel


# ----------------------------------------------------------------------------
# Host-side constant builders (computed once, cached)
# ----------------------------------------------------------------------------
def _bilinear_matrix_np(in_size, out_size):
    """Row-interpolation matrix matching nn.Upsample(bilinear, align_corners=False)."""
    scale = in_size / out_size
    dst = np.arange(out_size, dtype=np.float64)
    src = (dst + 0.5) * scale - 0.5
    src = np.maximum(src, 0.0)
    lo = np.minimum(np.floor(src).astype(np.int64), in_size - 1)
    hi = np.minimum(lo + 1, in_size - 1)
    frac = (src - lo).astype(np.float32)
    A = np.zeros((out_size, in_size), np.float32)
    rows = np.arange(out_size)
    A[rows, lo] += (1.0 - frac)
    A[rows, hi] += frac
    return A


# ----------------------------------------------------------------------------
# _ConvBlock equivalent
# ----------------------------------------------------------------------------
class ConvBlockPallas:
    """Pallas version of PlasmaNet msnet._ConvBlock.

    Supports padding_mode='zeros' and upsample_mode='bilinear' (the defaults).
    """
    # TODO(synk): padding_mode in {'reflect','circular','replicate'} and
    # non-bilinear upsample modes are not implemented here.
    # TODO(synk): at large spatial sizes the dense kron(A_h, A_w) upsample
    # matrix should be replaced by a separable / row-tiled form to fit v7x's
    # 64 MiB VMEM; at these block sizes it is a 1 MiB constant.

    def __init__(self, fmaps, out_size, block_type, kernel_size, key):
        self.block_type = block_type
        self.out_size = tuple(out_size)
        self.K = int(kernel_size)
        self.fmaps = tuple(fmaps)
        self.n_layers = len(fmaps) - 1
        self.has_upsample = (block_type == 'middle')
        self.relu = tuple((i != self.n_layers - 1) or (block_type != 'out')
                          for i in range(self.n_layers))

        K = self.K
        self.params = []      # raw (OIHW weight, bias) for the reference
        self.w_packed = []    # (Cout_pad, K*K*Cin_pad) kernel-layout weights
        self.b_packed = []    # (Cout_pad, 1)
        for i in range(self.n_layers):
            key, wk, bk = jax.random.split(key, 3)
            cin, cout = fmaps[i], fmaps[i + 1]
            fan_in = cin * K * K
            bound = 1.0 / float(fan_in) ** 0.5
            # deterministic synthetic params (torch-like uniform bounds), OIHW
            w = jax.random.uniform(wk, (cout, cin, K, K),
                                   jnp.float32, -bound, bound)
            b = jax.random.uniform(bk, (cout,), jnp.float32, -bound, bound)
            self.params.append((w, b))

            cin_p, cout_p = _round_up(cin, 8), _round_up(cout, 8)
            w_np = np.asarray(w)
            w2 = np.zeros((cout_p, K * K * cin_p), np.float32)
            for kh in range(K):
                for kw in range(K):
                    t = kh * K + kw
                    w2[:cout, t * cin_p:t * cin_p + cin] = w_np[:, :, kh, kw]
            b2 = np.zeros((cout_p, 1), np.float32)
            b2[:cout, 0] = np.asarray(b)
            self.w_packed.append(jnp.asarray(w2))
            self.b_packed.append(jnp.asarray(b2))

        self._spatial_cache = {}   # (H, W) -> (masks, shifts, Mt)

    # -- per-input-size constants (masks, roll shifts, upsample matrix) ------
    def _spatial_constants(self, H, W):
        cache_key = (H, W)
        if cache_key in self._spatial_cache:
            return self._spatial_cache[cache_key]
        K = self.K
        p = (K - 1) // 2
        HW = H * W
        yy, xx = np.divmod(np.arange(HW), W)
        masks = np.zeros((K * K, 1, HW), np.float32)
        shifts = []
        for kh in range(K):
            for kw in range(K):
                dh, dw = kh - p, kw - p
                t = kh * K + kw
                shifts.append(int((-(dh * W + dw)) % HW))
                valid = ((yy + dh >= 0) & (yy + dh < H) &
                         (xx + dw >= 0) & (xx + dw < W))
                masks[t, 0, :] = valid.astype(np.float32)
        Mt = None
        if self.has_upsample:
            Ho, Wo = self.out_size
            A_h = _bilinear_matrix_np(H, Ho)
            A_w = _bilinear_matrix_np(W, Wo)
            Mt = jnp.asarray(np.kron(A_h, A_w).T)          # (H*W, Ho*Wo)
        consts = (jnp.asarray(masks), tuple(shifts), Mt)
        self._spatial_cache[cache_key] = consts
        return consts

    # -- forward --------------------------------------------------------------
    def __call__(self, x_nchw):
        N, C0, H, W = x_nchw.shape
        assert C0 == self.fmaps[0]
        HW = H * W
        masks, shifts, Mt = self._spatial_constants(H, W)

        # NCHW flattened to (N, C, H*W): channels on sublanes, spatial on lanes.
        cin_p0 = _round_up(C0, 8)
        x2 = x_nchw.reshape(N, C0, HW).astype(jnp.float32)
        if cin_p0 != C0:
            x2 = jnp.pad(x2, ((0, 0), (0, cin_p0 - C0), (0, 0)))

        c_final = self.fmaps[-1]
        c_final_p = self.w_packed[-1].shape[0]
        if self.has_upsample:
            Ho, Wo = self.out_size
            s_out = Ho * Wo
        else:
            Ho, Wo = H, W
            s_out = HW

        kernel = _make_fused_kernel(
            n_layers=self.n_layers, kk=self.K * self.K, shifts=shifts,
            relu=self.relu, has_upsample=self.has_upsample)

        in_specs = [
            pl.BlockSpec((None, cin_p0, HW), lambda n: (n, 0, 0)),
            pl.BlockSpec(masks.shape, lambda n: (0, 0, 0)),
        ]
        inputs = [x2, masks]
        for w2, b2 in zip(self.w_packed, self.b_packed):
            in_specs.append(pl.BlockSpec(w2.shape, lambda n: (0, 0)))
            in_specs.append(pl.BlockSpec(b2.shape, lambda n: (0, 0)))
            inputs.extend([w2, b2])
        if self.has_upsample:
            in_specs.append(pl.BlockSpec(Mt.shape, lambda n: (0, 0)))
            inputs.append(Mt)

        out = pl.pallas_call(
            kernel,
            out_shape=jax.ShapeDtypeStruct((N, c_final_p, s_out), jnp.float32),
            grid=(N,),
            in_specs=in_specs,
            out_specs=pl.BlockSpec((None, c_final_p, s_out),
                                   lambda n: (n, 0, 0)),
            compiler_params=pltpu.CompilerParams(
                dimension_semantics=("parallel",)),
        )(*inputs)

        out = out[:, :c_final, :]
        return out.reshape(N, c_final, Ho, Wo)


# ----------------------------------------------------------------------------
# Pure-JAX reference (for correctness check only)
# ----------------------------------------------------------------------------
def reference_forward(x_nchw, params, block_type, out_size, kernel_size):
    p = (kernel_size - 1) // 2
    x = x_nchw
    n_layers = len(params)
    for i, (w, b) in enumerate(params):
        x = lax.conv_general_dilated(
            x, w, (1, 1), [(p, p), (p, p)],
            dimension_numbers=('NCHW', 'OIHW', 'NCHW'),
            precision=lax.Precision.HIGHEST)
        x = x + b.reshape(1, -1, 1, 1)
        if (i != n_layers - 1) or (block_type != 'out'):
            x = jnp.maximum(x, 0.0)
    if block_type == 'middle':
        Ho, Wo = out_size
        A_h = jnp.asarray(_bilinear_matrix_np(x.shape[2], Ho))
        A_w = jnp.asarray(_bilinear_matrix_np(x.shape[3], Wo))
        x = jnp.einsum('oh,nchw->ncow', A_h, x, precision=lax.Precision.HIGHEST)
        x = jnp.einsum('pw,ncow->ncop', A_w, x, precision=lax.Precision.HIGHEST)
    return x


if __name__ == "__main__":
    key = jax.random.PRNGKey(0)
    key, xk = jax.random.split(key)

    N, Cin, H, W = 2, 4, 16, 16
    fmaps = (4, 8, 8)
    out_size = (32, 32)
    kernel_size = 3

    x = jax.random.normal(xk, (N, Cin, H, W), jnp.float32)

    # 'middle' block: convs + ReLU + bilinear upsample
    key, k1 = jax.random.split(key)
    block_mid = ConvBlockPallas(fmaps, out_size, 'middle', kernel_size, k1)
    y = jax.block_until_ready(block_mid(x))
    assert y.shape == (N, fmaps[-1], out_size[0], out_size[1]), y.shape
    y_ref = reference_forward(x, block_mid.params, 'middle', out_size,
                              kernel_size)
    assert jnp.allclose(y, y_ref, atol=1e-3, rtol=1e-3), (
        "middle max abs err:", float(jnp.max(jnp.abs(y - y_ref))))

    # 'out' block: last conv without ReLU, no upsample
    key, k2 = jax.random.split(key)
    block_out = ConvBlockPallas(fmaps, out_size, 'out', kernel_size, k2)
    y2 = jax.block_until_ready(block_out(x))
    assert y2.shape == (N, fmaps[-1], H, W), y2.shape
    y2_ref = reference_forward(x, block_out.params, 'out', out_size,
                               kernel_size)
    assert jnp.allclose(y2, y2_ref, atol=1e-3, rtol=1e-3), (
        "out max abs err:", float(jnp.max(jnp.abs(y2 - y2_ref))))

    print("KERNEL_OK")
</pallas_src>

<mosaic_0001>
module attributes {stable_mosaic.version = 11 : i64} {
  func.func @kernel(%arg0: i32, %arg1: memref<1x8x256xf32, #tpu.memory_space<vmem>>, %arg2: memref<9x1x256xf32, #tpu.memory_space<vmem>>, %arg3: memref<8x72xf32, #tpu.memory_space<vmem>>, %arg4: memref<8x1xf32, #tpu.memory_space<vmem>>, %arg5: memref<8x72xf32, #tpu.memory_space<vmem>>, %arg6: memref<8x1xf32, #tpu.memory_space<vmem>>, %arg7: memref<256x1024xf32, #tpu.memory_space<vmem>>, %arg8: memref<1x8x1024xf32, #tpu.memory_space<vmem>>) attributes {dimension_semantics = [#tpu.dimension_semantics<parallel>], iteration_bounds = array<i64: 2>, scalar_prefetch = 0 : i64, scratch_operands = 0 : i64, tpu.core_type = #tpu.core_type<tc>, window_params = [{transform_indices = @transform_0, window_bounds = array<i64: 1, 8, 256>}, {pipeline_mode = #tpu.pipeline_mode<synchronous>, transform_indices = @transform_1, window_bounds = array<i64: 9, 1, 256>}, {pipeline_mode = #tpu.pipeline_mode<synchronous>, transform_indices = @transform_2, window_bounds = array<i64: 8, 72>}, {pipeline_mode = #tpu.pipeline_mode<synchronous>, transform_indices = @transform_3, window_bounds = array<i64: 8, 1>}, {pipeline_mode = #tpu.pipeline_mode<synchronous>, transform_indices = @transform_4, window_bounds = array<i64: 8, 72>}, {pipeline_mode = #tpu.pipeline_mode<synchronous>, transform_indices = @transform_5, window_bounds = array<i64: 8, 1>}, {pipeline_mode = #tpu.pipeline_mode<synchronous>, transform_indices = @transform_6, window_bounds = array<i64: 256, 1024>}, {transform_indices = @transform_7, window_bounds = array<i64: 1, 8, 1024>}]} {
    %c0 = arith.constant 0 : index
    %c0_0 = arith.constant 0 : index
    %c0_1 = arith.constant 0 : index
    %0 = vector.load %arg2[%c0, %c0_0, %c0_1] : memref<9x1x256xf32, #tpu.memory_space<vmem>>, vector<1x1x256xf32>
    %1 = vector.shape_cast %0 : vector<1x1x256xf32> to vector<1x256xf32>
    %c1 = arith.constant 1 : index
    %c0_2 = arith.constant 0 : index
    %c0_3 = arith.constant 0 : index
    %2 = vector.load %arg2[%c1, %c0_2, %c0_3] : memref<9x1x256xf32, #tpu.memory_space<vmem>>, vector<1x1x256xf32>
    %3 = vector.shape_cast %2 : vector<1x1x256xf32> to vector<1x256xf32>
    %c2 = arith.constant 2 : index
    %c0_4 = arith.constant 0 : index
    %c0_5 = arith.constant 0 : index
    %4 = vector.load %arg2[%c2, %c0_4, %c0_5] : memref<9x1x256xf32, #tpu.memory_space<vmem>>, vector<1x1x256xf32>
    %5 = vector.shape_cast %4 : vector<1x1x256xf32> to vector<1x256xf32>
    %c3 = arith.constant 3 : index
    %c0_6 = arith.constant 0 : index
    %c0_7 = arith.constant 0 : index
    %6 = vector.load %arg2[%c3, %c0_6, %c0_7] : memref<9x1x256xf32, #tpu.memory_space<vmem>>, vector<1x1x256xf32>
    %7 = vector.shape_cast %6 : vector<1x1x256xf32> to vector<1x256xf32>
    %c4 = arith.constant 4 : index
    %c0_8 = arith.constant 0 : index
    %c0_9 = arith.constant 0 : index
    %8 = vector.load %arg2[%c4, %c0_8, %c0_9] : memref<9x1x256xf32, #tpu.memory_space<vmem>>, vector<1x1x256xf32>
    %9 = vector.shape_cast %8 : vector<1x1x256xf32> to vector<1x256xf32>
    %c5 = arith.constant 5 : index
    %c0_10 = arith.constant 0 : index
    %c0_11 = arith.constant 0 : index
    %10 = vector.load %arg2[%c5, %c0_10, %c0_11] : memref<9x1x256xf32, #tpu.memory_space<vmem>>, vector<1x1x256xf32>
    %11 = vector.shape_cast %10 : vector<1x1x256xf32> to vector<1x256xf32>
    %c6 = arith.constant 6 : index
    %c0_12 = arith.constant 0 : index
    %c0_13 = arith.constant 0 : index
    %12 = vector.load %arg2[%c6, %c0_12, %c0_13] : memref<9x1x256xf32, #tpu.memory_space<vmem>>, vector<1x1x256xf32>
    %13 = vector.shape_cast %12 : vector<1x1x256xf32> to vector<1x256xf32>
    %c7 = arith.constant 7 : index
    %c0_14 = arith.constant 0 : index
    %c0_15 = arith.constant 0 : index
    %14 = vector.load %arg2[%c7, %c0_14, %c0_15] : memref<9x1x256xf32, #tpu.memory_space<vmem>>, vector<1x1x256xf32>
    %15 = vector.shape_cast %14 : vector<1x1x256xf32> to vector<1x256xf32>
    %c8 = arith.constant 8 : index
    %c0_16 = arith.constant 0 : index
    %c0_17 = arith.constant 0 : index
    %16 = vector.load %arg2[%c8, %c0_16, %c0_17] : memref<9x1x256xf32, #tpu.memory_space<vmem>>, vector<1x1x256xf32>
    %17 = vector.shape_cast %16 : vector<1x1x256xf32> to vector<1x256xf32>
    %c0_18 = arith.constant 0 : index
    %c0_19 = arith.constant 0 : index
    %c0_20 = arith.constant 0 : index
    %18 = vector.load %arg1[%c0_18, %c0_19, %c0_20] : memref<1x8x256xf32, #tpu.memory_space<vmem>>, vector<1x8x256xf32>
    %19 = vector.shape_cast %18 : vector<1x8x256xf32> to vector<8x256xf32>
    %c17_i32 = arith.constant 17 : i32
    %20 = tpu.dynamic_rotate %19 by %c17_i32 dim 1 : vector<8x256xf32>, i32 -> vector<8x256xf32>
    %21 = vector.broadcast %1 : vector<1x256xf32> to vector<8x256xf32>
    %22 = arith.mulf %20, %21 : vector<8x256xf32>
    %c16_i32 = arith.constant 16 : i32
    %23 = tpu.dynamic_rotate %19 by %c16_i32 dim 1 : vector<8x256xf32>, i32 -> vector<8x256xf32>
    %24 = vector.broadcast %3 : vector<1x256xf32> to vector<8x256xf32>
    %25 = arith.mulf %23, %24 : vector<8x256xf32>
    %c15_i32 = arith.constant 15 : i32
    %26 = tpu.dynamic_rotate %19 by %c15_i32 dim 1 : vector<8x256xf32>, i32 -> vector<8x256xf32>
    %27 = vector.broadcast %5 : vector<1x256xf32> to vector<8x256xf32>
    %28 = arith.mulf %26, %27 : vector<8x256xf32>
    %c1_i32 = arith.constant 1 : i32
    %29 = tpu.dynamic_rotate %19 by %c1_i32 dim 1 : vector<8x256xf32>, i32 -> vector<8x256xf32>
    %30 = vector.broadcast %7 : vector<1x256xf32> to vector<8x256xf32>
    %31 = arith.mulf %29, %30 : vector<8x256xf32>
    %32 = vector.broadcast %9 : vector<1x256xf32> to vector<8x256xf32>
    %33 = arith.mulf %19, %32 : vector<8x256xf32>
    %c255_i32 = arith.constant 255 : i32
    %34 = tpu.dynamic_rotate %19 by %c255_i32 dim 1 : vector<8x256xf32>, i32 -> vector<8x256xf32>
    %35 = vector.broadcast %11 : vector<1x256xf32> to vector<8x256xf32>
    %36 = arith.mulf %34, %35 : vector<8x256xf32>
    %c241_i32 = arith.constant 241 : i32
    %37 = tpu.dynamic_rotate %19 by %c241_i32 dim 1 : vector<8x256xf32>, i32 -> vector<8x256xf32>
    %38 = vector.broadcast %13 : vector<1x256xf32> to vector<8x256xf32>
    %39 = arith.mulf %37, %38 : vector<8x256xf32>
    %c240_i32 = arith.constant 240 : i32
    %40 = tpu.dynamic_rotate %19 by %c240_i32 dim 1 : vector<8x256xf32>, i32 -> vector<8x256xf32>
    %41 = vector.broadcast %15 : vector<1x256xf32> to vector<8x256xf32>
    %42 = arith.mulf %40, %41 : vector<8x256xf32>
    %c239_i32 = arith.constant 239 : i32
    %43 = tpu.dynamic_rotate %19 by %c239_i32 dim 1 : vector<8x256xf32>, i32 -> vector<8x256xf32>
    %44 = vector.broadcast %17 : vector<1x256xf32> to vector<8x256xf32>
    %45 = arith.mulf %43, %44 : vector<8x256xf32>
    %46 = tpu.concatenate %22, %25, %28, %31, %33, %36, %39, %42, %45 in 0 : vector<8x256xf32>, vector<8x256xf32>, vector<8x256xf32>, vector<8x256xf32>, vector<8x256xf32>, vector<8x256xf32>, vector<8x256xf32>, vector<8x256xf32>, vector<8x256xf32> -> vector<72x256xf32>
    %c0_21 = arith.constant 0 : index
    %c0_22 = arith.constant 0 : index
    %47 = vector.load %arg3[%c0_21, %c0_22] : memref<8x72xf32, #tpu.memory_space<vmem>>, vector<8x72xf32>
    %cst = arith.constant dense<0.000000e+00> : vector<8x256xf32>
    %48 = tpu.matmul %47, %46, %cst {dimension_numbers = #tpu.dot_dimension_numbers<[1], [0], [0], [1], [0, 0, 1, 1], [], []>} : vector<8x72xf32>, vector<72x256xf32>, vector<8x256xf32> -> vector<8x256xf32>
    %c0_23 = arith.constant 0 : index
    %c0_24 = arith.constant 0 : index
    %49 = vector.load %arg4[%c0_23, %c0_24] : memref<8x1xf32, #tpu.memory_space<vmem>>, vector<8x1xf32>
    %50 = vector.broadcast %49 : vector<8x1xf32> to vector<8x256xf32>
    %51 = arith.addf %48, %50 : vector<8x256xf32>
    %cst_25 = arith.constant 0.000000e+00 : f32
    %52 = vector.broadcast %cst_25 : f32 to vector<8x256xf32>
    %53 = arith.maximumf %51, %52 : vector<8x256xf32>
    %c17_i32_26 = arith.constant 17 : i32
    %54 = tpu.dynamic_rotate %53 by %c17_i32_26 dim 1 : vector<8x256xf32>, i32 -> vector<8x256xf32>
    %55 = vector.broadcast %1 : vector<1x256xf32> to vector<8x256xf32>
    %56 = arith.mulf %54, %55 : vector<8x256xf32>
    %c16_i32_27 = arith.constant 16 : i32
    %57 = tpu.dynamic_rotate %53 by %c16_i32_27 dim 1 : vector<8x256xf32>, i32 -> vector<8x256xf32>
    %58 = vector.broadcast %3 : vector<1x256xf32> to vector<8x256xf32>
    %59 = arith.mulf %57, %58 : vector<8x256xf32>
    %c15_i32_28 = arith.constant 15 : i32
    %60 = tpu.dynamic_rotate %53 by %c15_i32_28 dim 1 : vector<8x256xf32>, i32 -> vector<8x256xf32>
    %61 = vector.broadcast %5 : vector<1x256xf32> to vector<8x256xf32>
    %62 = arith.mulf %60, %61 : vector<8x256xf32>
    %c1_i32_29 = arith.constant 1 : i32
    %63 = tpu.dynamic_rotate %53 by %c1_i32_29 dim 1 : vector<8x256xf32>, i32 -> vector<8x256xf32>
    %64 = vector.broadcast %7 : vector<1x256xf32> to vector<8x256xf32>
    %65 = arith.mulf %63, %64 : vector<8x256xf32>
    %66 = vector.broadcast %9 : vector<1x256xf32> to vector<8x256xf32>
    %67 = arith.mulf %53, %66 : vector<8x256xf32>
    %c255_i32_30 = arith.constant 255 : i32
    %68 = tpu.dynamic_rotate %53 by %c255_i32_30 dim 1 : vector<8x256xf32>, i32 -> vector<8x256xf32>
    %69 = vector.broadcast %11 : vector<1x256xf32> to vector<8x256xf32>
    %70 = arith.mulf %68, %69 : vector<8x256xf32>
    %c241_i32_31 = arith.constant 241 : i32
    %71 = tpu.dynamic_rotate %53 by %c241_i32_31 dim 1 : vector<8x256xf32>, i32 -> vector<8x256xf32>
    %72 = vector.broadcast %13 : vector<1x256xf32> to vector<8x256xf32>
    %73 = arith.mulf %71, %72 : vector<8x256xf32>
    %c240_i32_32 = arith.constant 240 : i32
    %74 = tpu.dynamic_rotate %53 by %c240_i32_32 dim 1 : vector<8x256xf32>, i32 -> vector<8x256xf32>
    %75 = vector.broadcast %15 : vector<1x256xf32> to vector<8x256xf32>
    %76 = arith.mulf %74, %75 : vector<8x256xf32>
    %c239_i32_33 = arith.constant 239 : i32
    %77 = tpu.dynamic_rotate %53 by %c239_i32_33 dim 1 : vector<8x256xf32>, i32 -> vector<8x256xf32>
    %78 = vector.broadcast %17 : vector<1x256xf32> to vector<8x256xf32>
    %79 = arith.mulf %77, %78 : vector<8x256xf32>
    %80 = tpu.concatenate %56, %59, %62, %65, %67, %70, %73, %76, %79 in 0 : vector<8x256xf32>, vector<8x256xf32>, vector<8x256xf32>, vector<8x256xf32>, vector<8x256xf32>, vector<8x256xf32>, vector<8x256xf32>, vector<8x256xf32>, vector<8x256xf32> -> vector<72x256xf32>
    %c0_34 = arith.constant 0 : index
    %c0_35 = arith.constant 0 : index
    %81 = vector.load %arg5[%c0_34, %c0_35] : memref<8x72xf32, #tpu.memory_space<vmem>>, vector<8x72xf32>
    %cst_36 = arith.constant dense<0.000000e+00> : vector<8x256xf32>
    %82 = tpu.matmul %81, %80, %cst_36 {dimension_numbers = #tpu.dot_dimension_numbers<[1], [0], [0], [1], [0, 0, 1, 1], [], []>} : vector<8x72xf32>, vector<72x256xf32>, vector<8x256xf32> -> vector<8x256xf32>
    %c0_37 = arith.constant 0 : index
    %c0_38 = arith.constant 0 : index
    %83 = vector.load %arg6[%c0_37, %c0_38] : memref<8x1xf32, #tpu.memory_space<vmem>>, vector<8x1xf32>
    %84 = vector.broadcast %83 : vector<8x1xf32> to vector<8x256xf32>
    %85 = arith.addf %82, %84 : vector<8x256xf32>
    %cst_39 = arith.constant 0.000000e+00 : f32
    %86 = vector.broadcast %cst_39 : f32 to vector<8x256xf32>
    %87 = arith.maximumf %85, %86 : vector<8x256xf32>
    %c0_40 = arith.constant 0 : index
    %c0_41 = arith.constant 0 : index
    %88 = vector.load %arg7[%c0_40, %c0_41] : memref<256x1024xf32, #tpu.memory_space<vmem>>, vector<256x1024xf32>
    %cst_42 = arith.constant dense<0.000000e+00> : vector<8x1024xf32>
    %89 = tpu.matmul %87, %88, %cst_42 {dimension_numbers = #tpu.dot_dimension_numbers<[1], [0], [0], [1], [0, 0, 1, 1], [], []>} : vector<8x256xf32>, vector<256x1024xf32>, vector<8x1024xf32> -> vector<8x1024xf32>
    %c0_43 = arith.constant 0 : index
    %c0_44 = arith.constant 0 : index
    %c0_45 = arith.constant 0 : index
    %90 = vector.load %arg8[%c0_43, %c0_44, %c0_45] : memref<1x8x1024xf32, #tpu.memory_space<vmem>>, vector<1x8x1024xf32>
    %91 = vector.shape_cast %90 : vector<1x8x1024xf32> to vector<8x1024xf32>
    %92 = vector.shape_cast %89 : vector<8x1024xf32> to vector<1x8x1024xf32>
    tpu.vector_store %arg8[%c0_43, %c0_44, %c0_45], %92 {strides = array<i32>} : memref<1x8x1024xf32, #tpu.memory_space<vmem>>, vector<1x8x1024xf32>,
    return
  }
  func.func @transform_0(%arg0: i32) -> (i32, i32, i32) {
    %c0_i32 = arith.constant 0 : i32
    %c0_i32_0 = arith.constant 0 : i32
    %c0_i32_1 = arith.constant 0 : i32
    return %arg0, %c0_i32, %c0_i32_0 : i32, i32, i32
  }
  func.func @transform_1(%arg0: i32) -> (i32, i32, i32) {
    %c0_i32 = arith.constant 0 : i32
    %c0_i32_0 = arith.constant 0 : i32
    %c0_i32_1 = arith.constant 0 : i32
    %c0_i32_2 = arith.constant 0 : i32
    return %c0_i32, %c0_i32_0, %c0_i32_1 : i32, i32, i32
  }
  func.func @transform_2(%arg0: i32) -> (i32, i32) {
    %c0_i32 = arith.constant 0 : i32
    %c0_i32_0 = arith.constant 0 : i32
    %c0_i32_1 = arith.constant 0 : i32
    return %c0_i32, %c0_i32_0 : i32, i32
  }
  func.func @transform_3(%arg0: i32) -> (i32, i32) {
    %c0_i32 = arith.constant 0 : i32
    %c0_i32_0 = arith.constant 0 : i32
    %c0_i32_1 = arith.constant 0 : i32
    return %c0_i32, %c0_i32_0 : i32, i32
  }
  func.func @transform_4(%arg0: i32) -> (i32, i32) {
    %c0_i32 = arith.constant 0 : i32
    %c0_i32_0 = arith.constant 0 : i32
    %c0_i32_1 = arith.constant 0 : i32
    return %c0_i32, %c0_i32_0 : i32, i32
  }
  func.func @transform_5(%arg0: i32) -> (i32, i32) {
    %c0_i32 = arith.constant 0 : i32
    %c0_i32_0 = arith.constant 0 : i32
    %c0_i32_1 = arith.constant 0 : i32
    return %c0_i32, %c0_i32_0 : i32, i32
  }
  func.func @transform_6(%arg0: i32) -> (i32, i32) {
    %c0_i32 = arith.constant 0 : i32
    %c0_i32_0 = arith.constant 0 : i32
    %c0_i32_1 = arith.constant 0 : i32
    return %c0_i32, %c0_i32_0 : i32, i32
  }
  func.func @transform_7(%arg0: i32) -> (i32, i32, i32) {
    %c0_i32 = arith.constant 0 : i32
    %c0_i32_0 = arith.constant 0 : i32
    %c0_i32_1 = arith.constant 0 : i32
    return %arg0, %c0_i32, %c0_i32_0 : i32, i32, i32
  }
}

</mosaic_0001>

<bundles_post_ra>
// kernel: tpu_custom_call.1
= control target key start
LH: loop header
LB: loop body
LE: loop exit
PB: predicated region body
PF: predicated region fallthrough
CT: control target
= control target key end

     0   :  { %s2265_s0 = inlined_call_operand.hbm [shape: f32[2,8,256], index: 0, kind: input, shape index: {}]   ;;  %s2266_s1 = inlined_call_operand.vmem [shape: f32[9,1,256], index: 1, kind: input, shape index: {}]   ;;  %s2267_s2 = inlined_call_operand.hbm [shape: f32[8,72], index: 2, kind: input, shape index: {}]   ;;  %s2268_s3 = inlined_call_operand.vmem [shape: f32[8,1], index: 3, kind: input, shape index: {}]   ;;  %s2269_s4 = inlined_call_operand.hbm [shape: f32[8,72], index: 4, kind: input, shape index: {}]   ;;  %s2270_s5 = inlined_call_operand.vmem [shape: f32[8,1], index: 5, kind: input, shape index: {}]   ;;  %s2271_s6 = inlined_call_operand.hbm [shape: f32[256,1024], index: 6, kind: input, shape index: {}]   ;;  %s2272_s7 = inlined_call_operand.hbm [shape: f32[2,8,1024], index: 7, kind: output, shape index: {}]  }
   0x1   :  { %2277 = sst [smem:[#allocation15_spill]] %s2267_s2 }
   0x2   :  { %2278 = sst [smem:[#allocation16_spill]] %s2269_s4 }
   0x3   :  { %12 = vsyncpa [#allocation3], 0 }
   0x4   :  { %14 = vsyncpa [#allocation3 + $0x1], 0 }
   0x5   :  { %15 = vsyncpa [#allocation6], 0 }
   0x6   :  { %16 = vsyncpa [#allocation9], 0 }
   0x7   :  { %17 = vsyncpa [#allocation4], 0 }
   0x8   :  { %19 = vsyncpa [#allocation4 + $0x1], 0  ;;  %s1783_s24 = smov 0   ;;  %s1785_s25 = smov 0  }
   0x9   :  { %s1787_s26 = smov 0   ;;  %s1789_s27 = smov 0  }
   0xa LB: > { %s1804_s28 = sadd.s32 4294967295, %s1724_s27   ;;  %s1424_s29 = sadd.s32 4294967294, %s1724_s27   ;;  %s1724_s27 = sphi %s1789_s27, %s2300_s27   ;;  %s1720_s26 = sphi %s1787_s26, %s2299_s26   ;;  %s1716_s25 = sphi %s1785_s25, %s2298_s25   ;;  %s1712_s24 = sphi %s1783_s24, %s2297_s24  }
   0xb   : > { %p45_p0 = scmp.ne.s32.totalorder %s1716_s25, %s1712_s24  ;;  %p2273_p1 = scmp.eq.s32.totalorder %s1804_s28, 0 }
   0xc   : > { %p201_p3 = scmp.eq.s32.totalorder %s1424_s29, 1  ;;  %p1425_p5 = scmp.ge.s32.totalorder %s1724_s27, 1 }
   0xd   : > { %p1813_p4 = por %p2273_p1, %p45_p0  ;;  %p208_p7 = scmp.lt.s32.totalorder %s1724_s27, 3 }
   0xe   : > { %p1818_p6 = por %p201_p3, %p45_p0  ;;  %s1726_s10 = smov [#allocation5]  }
   0xf   : > { %s2279_s30 = scalar_select %p1813_p4, 1, 0 }
  0x10   : > { %s2280_s8 = scalar_select %p1818_p6, 1, 0 }
  0x11   : > { %p1823_p8 = pnand %p1425_p5, %p208_p7  ;;  %s224_s11 = sshll.u32 %s1726_s10, 4  ;;  %s225_s11 = int_to_ptr.vmem [resolvable:$true] %s224_s11 }
  0x12   : > { %s1727_s12 = smov [#allocation7]   ;;  %s1728_s15 = smov [#allocation8]  }
  0x13   : > { %s2281_s9 = scalar_select %p1823_p8, 1, 0 }
  0x14   : > { %p1472_p10 = pneg %p1823_p8  ;;  %s238_s13 = sshll.u32 %s1727_s12, 4  ;;  %s239_s13 = int_to_ptr.vmem [resolvable:$true] %s238_s13 }
  0x15   : > { %s251_s16 = sshll.u32 %s1728_s15, 4  ;;  %s1557_s17 = scalar_lea.vmem %s225_s11, 128  ;;  %s1836_s16 = int_to_ptr.vmem [resolvable:$true] %s251_s16 }
  0x16   : > { %p1832_p11 = pnand %p1472_p10, %p2273_p1  ;;  %p1558_p13 = scmp.ne.s32.totalorder %s225_s11, %s1557_s17 }
  0x17   : > { %p1565_p5 = scmp.lt.s32.totalorder %s225_s11, %s225_s11  ;;  %p1566_p7 = scmp.lt.s32.totalorder %s1557_s17, %s1557_s17 }
  0x18   : > { %p1548_p12 = pneg %p1832_p11 }
  0x19   : > { %p1567_p10 = por %p1566_p7, %p1565_p5 }
  0x1a   : > { %p1560_p0 = pnand %p1558_p13, %p1548_p12 }
  0x1c   : > { %p1561_p3 = pneg %p1560_p0 }
  0x1e   : > { %p1568_p9 = pnand %p1567_p10, %p1561_p3 }
  0x20   : > { %1571 = shalt.err (!%p1568_p9)
}
  0x21   : > { %s2283_s2 = sld [smem:[#allocation15_spill]]  ;;  %s1583_s20 = scalar_lea.vmem %s239_s13, 128 }
  0x22   : > { %p1584_p1 = scmp.ne.s32.totalorder %s239_s13, %s1583_s20  ;;  %p1591_p13 = scmp.lt.s32.totalorder %s239_s13, %s239_s13 }
  0x23   : > { %p1592_p0 = scmp.lt.s32.totalorder %s1583_s20, %s1583_s20 }
  0x24   : > { %p1586_p2 = pnand %p1584_p1, %p1548_p12 }
  0x25   : > { %p1593_p4 = por %p1592_p0, %p1591_p13 }
  0x26   : > { %p1587_p6 = pneg %p1586_p2 }
  0x27   : > { %1475 = dma.hbm_to_vmem [thread:$0]  (!%p1832_p11), %s2283_s2, 128, %s225_s11, [#allocation6]  }
  0x28   : > { %p1594_p8 = pnand %p1593_p4, %p1587_p6 }
  0x2a   : > { %1597 = shalt.err (!%p1594_p8)
}
  0x2b   : > { %s2284_s4 = sld [smem:[#allocation16_spill]]  ;;  %s1609_s23 = scalar_lea.vmem %s1836_s16, 32768 }
  0x2c   : > { %p1610_p9 = scmp.ne.s32.totalorder %s1836_s16, %s1609_s23  ;;  %p1617_p3 = scmp.lt.s32.totalorder %s1836_s16, %s1836_s16 }
  0x2d   : > { %p1618_p4 = scmp.lt.s32.totalorder %s1609_s23, %s1609_s23 }
  0x2e   : > { %p1612_p1 = pnand %p1610_p9, %p1548_p12 }
  0x2f   : > { %p1619_p6 = por %p1618_p4, %p1617_p3 }
  0x30   : > { %p1613_p2 = pneg %p1612_p1 }
  0x31   : > { %1478 = dma.hbm_to_vmem [thread:$0]  (!%p1832_p11), %s2284_s4, 128, %s239_s13, [#allocation6]  }
  0x32   : > { %p1620_p8 = pnand %p1619_p6, %p1613_p2 }
  0x34   : > { %1623 = shalt.err (!%p1620_p8)
}
  0x35   : > { %s1729_s29 = smov 1024   ;;  %s1730_s10 = smov 64  }
  0x36   : > { %1481 = dma.hbm_to_vmem [thread:$0]  (!%p1832_p11), %s2271_s6, 32768, %s1836_s16, [#allocation9], %s1729_s29, %s1729_s29, %s1730_s10  }
  0x37   : > { %s1870_s13 = sadd.s32 1, %s1724_s27   ;;  %s32_s17 = sadd.s32 1, %s1720_s26 }
  0x38   : > { %s29_s15 = ssub.s32 %s1724_s27, %s1870_s13  ;;  %p39_p5 = scmp.ne.s32.totalorder %s1720_s26, %s1716_s25 }
  0x39   : > { %p30_p12 = scmp.eq.s32.totalorder %s29_s15, 0  ;;  %p40_p7 = scmp.eq.s32.totalorder %s1724_s27, 0 }
  0x3a   : > { %p1493_p10 = scmp.lt.s32.totalorder %s1724_s27, 2  ;;  %p2285_p0 = scmp.eq.s32.totalorder %s1804_s28, 1 }
  0x3b   : > { %s1880_s18 = scalar_select %p30_p12, %s1720_s26, %s32_s17  }
  0x3c   : > { %p41_p13 = por %p40_p7, %p39_p5  ;;  %p1884_p9 = por %p2285_p0, %p39_p5 }
  0x3d   : > { %s265_s14 = sand.u32 1, %s1720_s26   ;;  %s1454_s20 = sshll.u32 %s1724_s27, 8 }
  0x3e   : > { %s2286_s19 = scalar_select %p1884_p9, 1, 0 }
  0x3f   : > { %s1430_s16 = sshll.u32 %s265_s14, 4  ;;  %s1893_s23 = scalar_lea.hbm %s2265_s0, %s1454_s20 }
  0x40   : > { %s269_s29 = scalar_lea.vmem [#allocation2], %s1430_s16  ;;  %p1895_p11 = pnand %p1493_p10, %p41_p13 }
  0x41   : > { %s277_s10 = sshll.u32 %s269_s29, 4  ;;  %s266_s12 = scalar_lea.sflag [#allocation3], %s265_s14  ;;  %s278_s10 = int_to_ptr.vmem [resolvable:$true] %s277_s10 }
  0x42   : > { %s1624_s15 = scalar_lea.hbm %s1893_s23, 256  ;;  %p1626_p2 = pneg %p1895_p11 }
  0x43   : > { %p1625_p1 = scmp.ne.s32.totalorder %s1893_s23, %s1624_s15  ;;  %s1629_s21 = scalar_lea.hbm %s2265_s0, 512 }
  0x44   : > { %p1630_p6 = scmp.lt.s32.totalorder %s1893_s23, %s2265_s0  ;;  %p1631_p8 = scmp.lt.s32.totalorder %s1629_s21, %s1624_s15 }
  0x45   : > { %p1627_p3 = pnand %p1626_p2, %p1625_p1 }
  0x46   : > { %p1632_p12 = por %p1631_p8, %p1630_p6 }
  0x47   : > { %p1628_p4 = pneg %p1627_p3 }
  0x49   : > { %p1633_p5 = pnand %p1632_p12, %p1628_p4 }
  0x4b   : > { %1636 = shalt.err (!%p1633_p5)
}
  0x4c   : > { %s1637_s29 = scalar_lea.vmem %s278_s10, 256  ;;  %s1731_s14 = smov [#allocation2]  }
  0x4d   : > { %p1638_p7 = scmp.ne.s32.totalorder %s278_s10, %s1637_s29  ;;  %s1642_s2 = sshll.u32 %s1731_s14, 4  ;;  %s1643_s2 = int_to_ptr.vmem [resolvable:$false] %s1642_s2 }
  0x4e   : > { %s1644_s4 = scalar_lea.vmem %s1643_s2, 512  ;;  %p1645_p0 = scmp.lt.s32.totalorder %s278_s10, %s1643_s2 }
  0x4f   : > { %p1640_p10 = pnand %p1638_p7, %p1626_p2  ;;  %p1646_p1 = scmp.lt.s32.totalorder %s1644_s4, %s1637_s29 }
  0x51   : > { %p1641_p13 = pneg %p1640_p10  ;;  %p1647_p3 = por %p1646_p1, %p1645_p0 }
  0x53   : > { %p1648_p9 = pnand %p1647_p3, %p1641_p13 }
  0x55   : > { %1651 = shalt.err (!%p1648_p9)
}
  0x56   : > { %1485 = dma.hbm_to_vmem [thread:$0]  (!%p1895_p11), %s1893_s23, 256, %s278_s10, %s266_s12  }
  0x57   : > { %p2288_p4 = scmp.ne.s32.totalorder %s2281_s9, 0 }
  0x58   : > { %s1916_s15 = sand.u32 (!%p2288_p4), 1, %s1716_s25   ;;  %p2289_p2 = scmp.ne.s32.totalorder (!%p2288_p4), %s2279_s30, 0 }
  0x59   : > { %286 = sbr.rel (%p2288_p4) target bundleno = 1072 (0x430), region = 48  ;;  %s1434_s17 = sshll.u32 (!%p2288_p4), %s1916_s15, 4 }
  0x5a   : > { %s289_s20 = scalar_lea.sflag (!%p2288_p4), [#allocation3], %s1916_s15  ;;  %s292_s2 = scalar_lea.vmem (!%p2288_p4), [#allocation2], %s1434_s17 }
  0x5e   : > { %1695 = dma.done.wait (%p2289_p2), %s289_s20, 256  }
  0x5f   : > { %1697 = vsyncadd (%p2289_p2), %s289_s20, 4294967040  ;;  %p2290_p9 = scmp.eq.s32.totalorder %s1804_s28, 0 }
  0x61   : > { %1699 = dma.done.wait (%p2290_p9), [#allocation6], 256   ;;  %p2291_p11 = pmov %p2290_p9 }
  0x62   : > { %p2292_p6 = pmov %p2290_p9 }
  0x63   : > { %1701 = vsyncadd (%p2291_p11), [#allocation6], 4294967040 }
  0x64   : > { %1703 = dma.done.wait (%p2292_p6), [#allocation9], 32768   ;;  %p2293_p8 = pmov %p2292_p6 }
  0x65   : > { %v1932_v0 = vld [vmem:[%s292_s2] sm:$0xff]  ;;  %s1732_s4 = smov 112   ;;  %s1733_s30 = smov 111   ;;  %v1938_v1 = vld [vmem:[%s292_s2 + $0x8] sm:$0xff]  ;;  %v1737_v2 = vmov 0.0   ;;  %v1739_v3 = vmov 0   ;;  %v358_v5 = vlaneseq }
  0x66   : > { %1705 = vsyncadd (%p2293_p8), [#allocation9], 4294934528  ;;  %489 = vrot.lane.b32.xlu1 %v1932_v0, %s1732_s4  ;;  %509 = vrot.lane.b32.xlu0 %v1932_v0, %s1733_s30  ;;  %s1734_s9 = smov 113   ;;  %s1735_s23 = smov 127   ;;  %v530_v4 = vld [vmem:[%s2268_s3] sm:$0xff]  ;;  %vm536_vm8 = vcmask 588800  }
  0x67   : > { %s1736_s10 = smov 1   ;;  %604 = vmatprep.mubr.f32.mxu0 %v1737_v2  ;;  %753 = vmatprep.mubr.f32.mxu1 %v1737_v2  ;;  %s1738_s11 = smov 15   ;;  %v365_v6 = vshrl.u32 %v358_v5, 7  ;;  %v1971_v7 = vand.u32 127, %v358_v5  ;;  %v1446_v10 = vld [vmem:[%s2266_s1 + $0x10] sm:$0x3] }
  0x68   : > { %1545 = vset.pattern.permute.xlu0 %v1739_v3  ;;  %s1740_s12 = smov 16   ;;  %s1741_s21 = smov 17   ;;  %v1445_v13 = vld [vmem:[%s2266_s1 + $0xe] sm:$0x3]  ;;  %v1444_v14 = vld [vmem:[%s2266_s1 + $0xc] sm:$0x3] }
  0x69   : > { %v1973_v8 = vsub.s32 0, %v365_v6  ;;  %v1975_v9 = vsub.s32 1, %v365_v6  ;;  %vm493_vm0 = vcmp.lt.s32.totalorder %v1971_v7, 112  ;;  %vm513_vm1 = vcmp.lt.s32.totalorder %v1971_v7, 111  ;;  %v1443_v29 = vld [vmem:[%s2266_s1 + $0xa] sm:$0x3] }
  0x6a   : > { %491 = vrot.lane.b32.xlu1 %v1938_v1, %s1732_s4  ;;  %511 = vrot.lane.b32.xlu0 %v1938_v1, %s1733_s30  ;;  %vm473_vm2 = vcmp.lt.s32.totalorder %v1971_v7, 113  ;;  %v1442_v30 = vld [vmem:[%s2266_s1 + $0x8] sm:$0x3]  ;;  %vm453_vm3 = vcmp.lt.s32.totalorder %v1971_v7, 127  ;;  %v1441_v41 = vld [vmem:[%s2266_s1 + $0x6] sm:$0x3] }
  0x6b   : > { %v1989_v15 = vrot.slane %v1446_v10, %v1975_v9  ;;  %v1992_v16 = vrot.slane %v1446_v10, %v1973_v8  ;;  %v1995_v18 = vrot.slane %v1445_v13, %v1973_v8  ;;  %v1998_v19 = vrot.slane %v1445_v13, %v1975_v9  ;;  %v1440_v54 = vld [vmem:[%s2266_s1 + $0x4] sm:$0x3]  ;;  %v1439_v63 = vld [vmem:[%s2266_s1 + $0x2] sm:$0x3]  ;;  %p2294_p5 = scmp.ne.s32.totalorder %s2286_s19, 0  ;;  %s1742_s16 = smov [#allocation10]  }
  0x6c   : > { %v2006_v23 = vrot.slane %v1444_v14, %v1973_v8  ;;  %v2013_v26 = vrot.slane %v1444_v14, %v1975_v9  ;;  %v2031_v37 = vrot.slane %v1443_v29, %v1973_v8  ;;  %v2036_v40 = vrot.slane %v1443_v29, %v1975_v9  ;;  %s1656_s29 = sshll.u32 %s1742_s16, 4  ;;  %s1657_s29 = int_to_ptr.vmem [resolvable:$false] %s1656_s29 }
  0x6d   : > { %v2042_v42 = vrot.slane %v1442_v30, %v1975_v9  ;;  %v2045_v43 = vrot.slane %v1442_v30, %v1973_v8  ;;  %vm420_vm4 = vcmp.lt.s32.totalorder %v1971_v7, 1  ;;  %v2053_v48 = vrot.slane %v1441_v41, %v1973_v8  ;;  %s1658_s14 = scalar_lea.vmem %s1657_s29, 2048 }
  0x6e   : > { %471 = vrot.lane.b32.xlu1 %v1938_v1, %s1734_s9  ;;  %469 = vrot.lane.b32.xlu0 %v1932_v0, %s1734_s9  ;;  %v2058_v51 = vrot.slane %v1441_v41, %v1975_v9  ;;  %vm400_vm5 = vcmp.lt.s32.totalorder %v1971_v7, 15  ;;  %v2075_v61 = vrot.slane %v1440_v54, %v1973_v8  ;;  %v2078_v62 = vrot.slane %v1440_v54, %v1975_v9  ;;  %v882_v41 = vld [vmem:[#allocation8 + $0x3c0] sm:$0xff] }
  0x6f   : > { %v448_v52 = vmul.f32 %v2042_v42, %v1938_v1  ;;  %v447_v53 = vmul.f32 %v2045_v43, %v1932_v0  ;;  %vm380_vm6 = vcmp.lt.s32.totalorder %v1971_v7, 16  ;;  %v2091_v6 = vrot.slane %v1439_v63, %v1973_v8  ;;  %v850_v54 = vld [vmem:[#allocation8 + $0x2c0] sm:$0xff] }
  0x70   : > { %v2094_v10 = vrot.slane %v1439_v63, %v1975_v9  ;;  %vm360_vm7 = vcmp.lt.s32.totalorder %v1971_v7, 17  ;;  %v819_v63 = vld [vmem:[#allocation8 + $0x1c8] sm:$0xff]  ;;  %v868_v7 = vld [vmem:[#allocation8 + $0x350] sm:$0xff] }
  0x72   : > { %451 = vrot.lane.b32.xlu1 %v1938_v1, %s1735_s23  ;;  %449 = vrot.lane.b32.xlu0 %v1932_v0, %s1735_s23 }
  0x76   : > { %418 = vrot.lane.b32.xlu1 %v1938_v1, %s1736_s10  ;;  %416 = vrot.lane.b32.xlu0 %v1932_v0, %s1736_s10 }
  0x7a   : > { %398 = vrot.lane.b32.xlu1 %v1938_v1, %s1738_s11  ;;  %396 = vrot.lane.b32.xlu0 %v1932_v0, %s1738_s11 }
  0x7e   : > { %378 = vrot.lane.b32.xlu1 %v1938_v1, %s1740_s12  ;;  %376 = vrot.lane.b32.xlu0 %v1932_v0, %s1740_s12 }
  0x82   : > { %356 = vrot.lane.b32.xlu1 %v1938_v1, %s1741_s21  ;;  %354 = vrot.lane.b32.xlu0 %v1932_v0, %s1741_s21 }
  0x86   : > { %533 = vperm.xlu0 %1545, %v530_v4  }
  0xd8   : > { %v490_v11 = vpop.permute.xlu1 %489  ;;  %v510_v12 = vpop.permute.xlu0 %509 }
  0xdc   : > { %v492_v17 = vpop.permute.xlu1 %491  ;;  %v512_v20 = vpop.permute.xlu0 %511 }
  0xdd   : > { %v495_v21 = vsel %vm493_vm0, %v492_v17, %v490_v11  ;;  %v514_v22 = vsel %vm513_vm1, %v510_v12, %v512_v20  ;;  %v515_v24 = vsel %vm513_vm1, %v512_v20, %v510_v12  ;;  %v494_v25 = vsel %vm493_vm0, %v490_v11, %v492_v17  ;;  %v335_v11 = vld [vmem:[%s2266_s1] sm:$0x3] }
  0xde   : > { %v528_v27 = vmul.f32 %v1989_v15, %v515_v24  ;;  %v527_v28 = vmul.f32 %v1992_v16, %v514_v22  ;;  %v508_v31 = vmul.f32 %v1998_v19, %v495_v21  ;;  %v507_v34 = vmul.f32 %v1995_v18, %v494_v25 }
  0xdf   : > { %v2107_v22 = vrot.slane %v335_v11, %v1973_v8  ;;  %v2110_v24 = vrot.slane %v335_v11, %v1975_v9  ;;  %v794_v11 = vld [vmem:[#allocation8 + $0x100] sm:$0xff] }
  0xe0   : > { %v472_v32 = vpop.permute.xlu1 %471  ;;  %v470_v33 = vpop.permute.xlu0 %469  ;;  %554 = vmatprep.subr.mxu0 %v528_v27 }
  0xe1   : > { %v474_v35 = vsel %vm473_vm2, %v470_v33, %v472_v32  ;;  %v475_v36 = vsel %vm473_vm2, %v472_v32, %v470_v33  ;;  %555 = vmatpush1.msra.mxu0 %v527_v28  ;;  %v529_v32 = vld [vmem:[#allocation5] sm:$0xff] }
  0xe2   : > { %v487_v38 = vmul.f32 %v2006_v23, %v474_v35  ;;  %v488_v39 = vmul.f32 %v2013_v26, %v475_v36  ;;  %556 = vmatprep.subr.mxu0 %v508_v31 }
  0xe3   : > { %557 = vmatpush1.msra.mxu0 %v507_v34 }
  0xe4   : > { %v452_v44 = vpop.permute.xlu1 %451  ;;  %v450_v45 = vpop.permute.xlu0 %449  ;;  %558 = vmatprep.subr.mxu0 %v488_v39  ;;  %v883_v39 = vld [vmem:[#allocation8 + $0x3c8] sm:$0xff] }
  0xe5   : > { %v454_v46 = vsel %vm453_vm3, %v450_v45, %v452_v44  ;;  %v455_v47 = vsel %vm453_vm3, %v452_v44, %v450_v45  ;;  %559 = vmatpush1.msra.mxu0 %v487_v38  ;;  %v680_v44 = vld [vmem:[%s2270_s5] sm:$0xff]  ;;  %v875_v45 = vld [vmem:[#allocation8 + $0x388] sm:$0xff] }
  0xe6   : > { %v467_v49 = vmul.f32 %v2031_v37, %v454_v46  ;;  %v468_v50 = vmul.f32 %v2036_v40, %v455_v47  ;;  %v874_v46 = vld [vmem:[#allocation8 + $0x380] sm:$0xff]  ;;  %v867_v47 = vld [vmem:[#allocation8 + $0x348] sm:$0xff] }
  0xe8   : > { %v419_v55 = vpop.permute.xlu1 %418  ;;  %v417_v56 = vpop.permute.xlu0 %416  ;;  %560 = vmatprep.subr.mxu0 %v468_v50  ;;  %v859_v50 = vld [vmem:[#allocation8 + $0x308] sm:$0xff] }
  0xe9   : > { %v421_v57 = vsel %vm420_vm4, %v417_v56, %v419_v55  ;;  %v422_v58 = vsel %vm420_vm4, %v419_v55, %v417_v56  ;;  %561 = vmatpush1.msra.mxu0 %v467_v49  ;;  %v866_v49 = vld [vmem:[#allocation8 + $0x340] sm:$0xff]  ;;  %v843_v55 = vld [vmem:[#allocation8 + $0x288] sm:$0xff] }
  0xea   : > { %v434_v59 = vmul.f32 %v2053_v48, %v422_v58  ;;  %v435_v60 = vmul.f32 %v2058_v51, %v421_v57  ;;  %562 = vmatprep.subr.mxu0 %v448_v52  ;;  %v858_v52 = vld [vmem:[#allocation8 + $0x300] sm:$0xff]  ;;  %v835_v57 = vld [vmem:[#allocation8 + $0x248] sm:$0xff] }
  0xeb   : > { %563 = vmatpush1.msra.mxu0 %v447_v53  ;;  %v851_v53 = vld [vmem:[#allocation8 + $0x2c8] sm:$0xff]  ;;  %v842_v56 = vld [vmem:[#allocation8 + $0x280] sm:$0xff] }
  0xec   : > { %v399_v0 = vpop.permute.xlu1 %398  ;;  %v397_v1 = vpop.permute.xlu0 %396  ;;  %564 = vmatprep.subr.mxu0 %v435_v60  ;;  %v834_v58 = vld [vmem:[#allocation8 + $0x240] sm:$0xff] }
  0xed   : > { %v401_v2 = vsel %vm400_vm5, %v397_v1, %v399_v0  ;;  %v402_v3 = vsel %vm400_vm5, %v399_v0, %v397_v1  ;;  %565 = vmatpush1.msra.mxu0 %v434_v59  ;;  %v827_v59 = vld [vmem:[#allocation8 + $0x208] sm:$0xff]  ;;  %v826_v60 = vld [vmem:[#allocation8 + $0x200] sm:$0xff] }
  0xee   : > { %v414_v4 = vmul.f32 %v2075_v61, %v402_v3  ;;  %v415_v5 = vmul.f32 %v2078_v62, %v401_v2  ;;  %v818_v0 = vld [vmem:[#allocation8 + $0x1c0] sm:$0xff]  ;;  %v811_v1 = vld [vmem:[#allocation8 + $0x188] sm:$0xff] }
  0xef   : > { %v810_v2 = vld [vmem:[#allocation8 + $0x180] sm:$0xff]  ;;  %v803_v3 = vld [vmem:[#allocation8 + $0x148] sm:$0xff] }
  0xf0   : > { %v379_v12 = vpop.permute.xlu1 %378  ;;  %v377_v13 = vpop.permute.xlu0 %376  ;;  %566 = vmatprep.subr.mxu0 %v415_v5  ;;  %v795_v5 = vld [vmem:[#allocation8 + $0x108] sm:$0xff] }
  0xf1   : > { %v381_v14 = vsel %vm380_vm6, %v377_v13, %v379_v12  ;;  %v382_v17 = vsel %vm380_vm6, %v379_v12, %v377_v13  ;;  %567 = vmatpush1.msra.mxu0 %v414_v4  ;;  %v802_v4 = vld [vmem:[#allocation8 + $0x140] sm:$0xff]  ;;  %v787_v12 = vld [vmem:[#allocation8 + $0xc8] sm:$0xff] }
  0xf2   : > { %v394_v20 = vmul.f32 %v2091_v6, %v382_v17  ;;  %v395_v21 = vmul.f32 %v2094_v10, %v381_v14  ;;  %v786_v13 = vld [vmem:[#allocation8 + $0xc0] sm:$0xff]  ;;  %v779_v14 = vld [vmem:[#allocation8 + $0x88] sm:$0xff] }
  0xf3   : > { %v778_v17 = vld [vmem:[#allocation8 + $0x80] sm:$0xff] }
  0xf4   : > { %v357_v25 = vpop.permute.xlu1 %356  ;;  %v355_v27 = vpop.permute.xlu0 %354  ;;  %568 = vmatprep.subr.mxu0 %v395_v21  ;;  %v770_v21 = vld [vmem:[#allocation8 + $0x40] sm:$0xff] }
  0xf5   : > { %v361_v28 = vsel %vm360_vm7, %v355_v27, %v357_v25  ;;  %v362_v29 = vsel %vm360_vm7, %v357_v25, %v355_v27  ;;  %569 = vmatpush1.msra.mxu0 %v394_v20  ;;  %v771_v20 = vld [vmem:[#allocation8 + $0x48] sm:$0xff]  ;;  %v762_v27 = vld [vmem:[#allocation8] sm:$0xff] }
  0xf6   : > { %v374_v30 = vmul.f32 %v2107_v22, %v362_v29  ;;  %v375_v31 = vmul.f32 %v2110_v24, %v361_v28  ;;  %v763_v25 = vld [vmem:[#allocation8 + $0x8] sm:$0xff]  ;;  %v1010_v29 = vld [vmem:[#allocation8 + $0x7c0] sm:$0xff] }
  0xf7   : > { %v1011_v28 = vld [vmem:[#allocation8 + $0x7c8] sm:$0xff] }
  0xf8   : > { %570 = vmatprep.subr.mxu0 %v375_v31  ;;  %v1002_v31 = vld [vmem:[#allocation8 + $0x780] sm:$0xff] }
  0xf9   : > { %571 = vmatpush1.msra.mxu0 %v374_v30  ;;  %v1003_v30 = vld [vmem:[#allocation8 + $0x788] sm:$0xff] }
  0xfa   : > { %1447 = vmatmul.mubr.msk.f32.vlgmr.msra.gmra.mxu0 %vm536_vm8, %v529_v32  ;;  %1018 = vmatprep.subr.mxu0 %v883_v39  ;;  %v995_v32 = vld [vmem:[#allocation8 + $0x748] sm:$0xff] }
  0xfb   : > { %1019 = vmatpush1.msra.mxu0 %v882_v41  ;;  %v971_v39 = vld [vmem:[#allocation8 + $0x688] sm:$0xff]  ;;  %v970_v41 = vld [vmem:[#allocation8 + $0x680] sm:$0xff] }
  0xfc   : > { %1020 = vmatprep.subr.mxu0 %v875_v45  ;;  %v962_v45 = vld [vmem:[#allocation8 + $0x640] sm:$0xff] }
  0xfd   : > { %1021 = vmatpush1.msra.mxu0 %v874_v46  ;;  %v955_v46 = vld [vmem:[#allocation8 + $0x608] sm:$0xff] }
  0xfe   : > { %1022 = vmatprep.subr.mxu0 %v867_v47  ;;  %v954_v47 = vld [vmem:[#allocation8 + $0x600] sm:$0xff] }
  0xff   : > { %1023 = vmatpush1.msra.mxu0 %v866_v49  ;;  %v947_v49 = vld [vmem:[#allocation8 + $0x5c8] sm:$0xff] }
 0x100   : > { %1024 = vmatprep.subr.mxu0 %v859_v50  ;;  %v946_v50 = vld [vmem:[#allocation8 + $0x5c0] sm:$0xff] }
 0x101   : > { %v534_v8 = vpop.permute.xlu0 %533  ;;  %1025 = vmatpush1.msra.mxu0 %v858_v52  ;;  %v939_v52 = vld [vmem:[#allocation8 + $0x588] sm:$0xff] }
 0x102   : > { %1026 = vmatprep.subr.mxu0 %v851_v53  ;;  %v938_v53 = vld [vmem:[#allocation8 + $0x580] sm:$0xff] }
 0x103   : > { %1027 = vmatpush1.msra.mxu0 %v850_v54  ;;  %v931_v54 = vld [vmem:[#allocation8 + $0x548] sm:$0xff] }
 0x104   : > { %1028 = vmatprep.subr.mxu0 %v843_v55  ;;  %v930_v55 = vld [vmem:[#allocation8 + $0x540] sm:$0xff] }
 0x105   : > { %1029 = vmatpush1.msra.mxu0 %v842_v56  ;;  %v923_v56 = vld [vmem:[#allocation8 + $0x508] sm:$0xff] }
 0x106   : > { %1030 = vmatprep.subr.mxu0 %v835_v57  ;;  %v922_v57 = vld [vmem:[#allocation8 + $0x500] sm:$0xff] }
 0x107   : > { %1031 = vmatpush1.msra.mxu0 %v834_v58  ;;  %v915_v58 = vld [vmem:[#allocation8 + $0x4c8] sm:$0xff] }
 0x108   : > { %1032 = vmatprep.subr.mxu0 %v827_v59 }
 0x109   : > { %1033 = vmatpush1.msra.mxu0 %v826_v60 }
 0x10a   : > { %1034 = vmatprep.subr.mxu0 %v819_v63 }
 0x10b   : > { %1035 = vmatpush1.msra.mxu0 %v818_v0 }
 0x10c   : > { %1036 = vmatprep.subr.mxu0 %v811_v1 }
 0x10d   : > { %1037 = vmatpush1.msra.mxu0 %v810_v2 }
 0x10e   : > { %1038 = vmatprep.subr.mxu0 %v803_v3 }
 0x10f   : > { %1039 = vmatpush1.msra.mxu0 %v802_v4 }
 0x110   : > { %1040 = vmatprep.subr.mxu0 %v795_v5 }
 0x111   : > { %1041 = vmatpush1.msra.mxu0 %v794_v11 }
 0x112   : > { %1042 = vmatprep.subr.mxu0 %v787_v12 }
 0x113   : > { %1043 = vmatpush1.msra.mxu0 %v786_v13 }
 0x114   : > { %1044 = vmatprep.subr.mxu0 %v779_v14 }
 0x115   : > { %1045 = vmatpush1.msra.mxu0 %v778_v17 }
 0x116   : > { %1046 = vmatprep.subr.mxu0 %v771_v20 }
 0x117   : > { %1047 = vmatpush1.msra.mxu0 %v770_v21 }
 0x118   : > { %1048 = vmatprep.subr.mxu0 %v763_v25 }
 0x119   : > { %1049 = vmatpush1.msra.mxu0 %v762_v27 }
 0x11a   : > { %1050 = vmatprep.subr.mxu0 %v1011_v28 }
 0x11b   : > { %1051 = vmatpush2.msra.mxu0 %v1010_v29 }
 0x11c   : > { %1052 = vmatprep.subr.mxu0 %v1003_v30 }
 0x11d   : > { %1053 = vmatpush2.msra.mxu0 %v1002_v31 }
 0x11e   : > { %1054 = vmatprep.subr.mxu0 %v995_v32 }
 0x1ba   : > { %v606_v9 = vpop.f32.mrf.mxu0 }
 0x1bb   : > { %v607_v33 = vadd.f32 %v606_v9, %v534_v8  ;;  %v987_v9 = vld [vmem:[#allocation8 + $0x708] sm:$0xff] }
 0x1bc   : > { %v608_v34 = vpop.f32.mrf.mxu0 }
 0x1bd   : > { %v2119_v35 = vmax.f32 %v607_v33, 0.0  ;;  %v609_v36 = vadd.f32 %v608_v34, %v534_v8  ;;  %v994_v8 = vld [vmem:[#allocation8 + $0x740] sm:$0xff]  ;;  %v979_v34 = vld [vmem:[#allocation8 + $0x6c8] sm:$0xff] }
 0x1be   : > { %v986_v33 = vld [vmem:[#allocation8 + $0x700] sm:$0xff]  ;;  %1055 = vmatpush2.msra.mxu0 %v994_v8 }
 0x1bf   : > { %663 = vrot.lane.b32.xlu0 %v2119_v35, %s1732_s4  ;;  %671 = vrot.lane.b32.xlu1 %v2119_v35, %s1733_s30  ;;  %v2125_v38 = vmax.f32 %v609_v36, 0.0  ;;  %v978_v36 = vld [vmem:[#allocation8 + $0x6c0] sm:$0xff] }
 0x1c0   : > { %1056 = vmatprep.subr.mxu0 %v987_v9  ;;  %v645_v9 = vmul.f32 %v2119_v35, %v2045_v43 }
 0x1c1   : > { %1057 = vmatpush2.msra.mxu0 %v986_v33 }
 0x1c2   : > { %1058 = vmatprep.subr.mxu0 %v979_v34 }
 0x1c3   : > { %655 = vrot.lane.b32.xlu0 %v2119_v35, %s1734_s9  ;;  %673 = vrot.lane.b32.xlu1 %v2125_v38, %s1733_s30 }
 0x1c4   : > { %1059 = vmatpush2.msra.mxu0 %v978_v36 }
 0x1c5   : > { %1060 = vmatprep.subr.mxu0 %v971_v39 }
 0x1c6   : > { %1061 = vmatpush2.msra.mxu0 %v970_v41 }
 0x1c7   : > { %647 = vrot.lane.b32.xlu0 %v2119_v35, %s1735_s23  ;;  %665 = vrot.lane.b32.xlu1 %v2125_v38, %s1732_s4 }
 0x1cb   : > { %637 = vrot.lane.b32.xlu0 %v2119_v35, %s1736_s10  ;;  %657 = vrot.lane.b32.xlu1 %v2125_v38, %s1734_s9  ;;  %s1438_s9 = sshll.u32 %s1916_s15, 6 }
 0x1cf   : > { %629 = vrot.lane.b32.xlu0 %v2119_v35, %s1738_s11  ;;  %649 = vrot.lane.b32.xlu1 %v2125_v38, %s1735_s23  ;;  %s334_s23 = scalar_lea.vmem [#allocation10], %s1438_s9 }
 0x1d3   : > { %621 = vrot.lane.b32.xlu0 %v2119_v35, %s1740_s12  ;;  %639 = vrot.lane.b32.xlu1 %v2125_v38, %s1736_s10  ;;  %s1455_s10 = sshll.u32 %s1804_s28, 10  ;;  %s1311_s28 = scalar_lea.sflag [#allocation4], %s1916_s15 }
 0x1d4   : > { %s2222_s2 = scalar_lea.hbm %s2272_s7, %s1455_s10 }
 0x1d7   : > { %613 = vrot.lane.b32.xlu0 %v2119_v35, %s1741_s21  ;;  %631 = vrot.lane.b32.xlu1 %v2125_v38, %s1738_s11  ;;  %s1325_s11 = sshll.u32 %s334_s23, 4  ;;  %s2224_s11 = int_to_ptr.vmem [resolvable:$true] %s1325_s11 }
 0x1d8   : > { %s1652_s22 = scalar_lea.vmem %s2224_s11, 1024  ;;  %p1659_p13 = scmp.lt.s32.totalorder %s2224_s11, %s1657_s29 }
 0x1d9   : > { %p1653_p12 = scmp.ne.s32.totalorder %s2224_s11, %s1652_s22  ;;  %p1660_p0 = scmp.lt.s32.totalorder %s1658_s14, %s1652_s22 }
 0x1db   : > { %683 = vperm.xlu0 %1545, %v680_v44   ;;  %623 = vrot.lane.b32.xlu1 %v2125_v38, %s1740_s12  ;;  %v963_v44 = vld [vmem:[#allocation8 + $0x648] sm:$0xff]  ;;  %p1654_p7 = pnand %p1653_p12, %p2294_p5  ;;  %p1661_p1 = por %p1660_p0, %p1659_p13 }
 0x1dc   : > { %1062 = vmatprep.subr.mxu0 %v963_v44 }
 0x1dd   : > { %1063 = vmatpush2.msra.mxu0 %v962_v45  ;;  %p1655_p10 = pneg %p1654_p7 }
 0x1de   : > { %1064 = vmatprep.subr.mxu0 %v955_v46 }
 0x1df   : > { %615 = vrot.lane.b32.xlu1 %v2125_v38, %s1741_s21  ;;  %1065 = vmatpush2.msra.mxu0 %v954_v47  ;;  %p1662_p3 = pnand %p1661_p1, %p1655_p10 }
 0x1e0   : > { %1066 = vmatprep.subr.mxu0 %v947_v49  ;;  %v679_v49 = vld [vmem:[#allocation7] sm:$0xff] }
 0x1e1   : > { %1067 = vmatpush2.msra.mxu0 %v946_v50  ;;  %v885_v50 = vld [vmem:[#allocation8 + $0x3d8] sm:$0xff] }
 0x1e2   : > { %1068 = vmatprep.subr.mxu0 %v939_v52  ;;  %v876_v52 = vld [vmem:[#allocation8 + $0x390] sm:$0xff] }
 0x1e3   : > { %1069 = vmatpush2.msra.mxu0 %v938_v53  ;;  %v869_v53 = vld [vmem:[#allocation8 + $0x358] sm:$0xff] }
 0x1e4   : > { %1070 = vmatprep.subr.mxu0 %v931_v54  ;;  %v861_v54 = vld [vmem:[#allocation8 + $0x318] sm:$0xff] }
 0x1e5   : > { %1071 = vmatpush2.msra.mxu0 %v930_v55  ;;  %v852_v55 = vld [vmem:[#allocation8 + $0x2d0] sm:$0xff] }
 0x1e6   : > { %1072 = vmatprep.subr.mxu0 %v923_v56  ;;  %v845_v56 = vld [vmem:[#allocation8 + $0x298] sm:$0xff] }
 0x1e7   : > { %1073 = vmatpush2.msra.mxu0 %v922_v57  ;;  %v844_v57 = vld [vmem:[#allocation8 + $0x290] sm:$0xff] }
 0x1e8   : > { %1074 = vmatprep.subr.mxu0 %v915_v58  ;;  %v837_v58 = vld [vmem:[#allocation8 + $0x258] sm:$0xff] }
 0x231   : > { %v664_v59 = vpop.permute.xlu0 %663  ;;  %v672_v60 = vpop.permute.xlu1 %671 }
 0x235   : > { %v656_v63 = vpop.permute.xlu0 %655  ;;  %v674_v0 = vpop.permute.xlu1 %673 }
 0x236   : > { %v675_v1 = vsel %vm513_vm1, %v672_v60, %v674_v0  ;;  %v676_v2 = vsel %vm513_vm1, %v674_v0, %v672_v60  ;;  %v829_v60 = vld [vmem:[#allocation8 + $0x218] sm:$0xff] }
 0x237   : > { %v678_v3 = vmul.f32 %v676_v2, %v1989_v15  ;;  %v677_v4 = vmul.f32 %v675_v1, %v1992_v16  ;;  %v821_v0 = vld [vmem:[#allocation8 + $0x1d8] sm:$0xff]  ;;  %v820_v1 = vld [vmem:[#allocation8 + $0x1d0] sm:$0xff] }
 0x238   : > { %v813_v2 = vld [vmem:[#allocation8 + $0x198] sm:$0xff] }
 0x239   : > { %v648_v5 = vpop.permute.xlu0 %647  ;;  %703 = vmatprep.subr.mxu1 %v678_v3  ;;  %v666_v11 = vpop.permute.xlu1 %665  ;;  %v812_v3 = vld [vmem:[#allocation8 + $0x190] sm:$0xff] }
 0x23a   : > { %v667_v12 = vsel %vm493_vm0, %v664_v59, %v666_v11  ;;  %v668_v13 = vsel %vm493_vm0, %v666_v11, %v664_v59  ;;  %704 = vmatpush1.msra.mxu1 %v677_v4  ;;  %v836_v59 = vld [vmem:[#allocation8 + $0x250] sm:$0xff]  ;;  %v805_v4 = vld [vmem:[#allocation8 + $0x158] sm:$0xff] }
 0x23b   : > { %v669_v14 = vmul.f32 %v667_v12, %v1995_v18  ;;  %v670_v17 = vmul.f32 %v668_v13, %v1998_v19  ;;  %v797_v11 = vld [vmem:[#allocation8 + $0x118] sm:$0xff]  ;;  %v796_v12 = vld [vmem:[#allocation8 + $0x110] sm:$0xff] }
 0x23c   : > { %v789_v13 = vld [vmem:[#allocation8 + $0xd8] sm:$0xff] }
 0x23d   : > { %705 = vmatprep.subr.mxu1 %v670_v17  ;;  %v658_v20 = vpop.permute.xlu1 %657  ;;  %v638_v21 = vpop.permute.xlu0 %637  ;;  %v781_v17 = vld [vmem:[#allocation8 + $0x98] sm:$0xff] }
 0x23e   : > { %v659_v15 = vsel %vm473_vm2, %v656_v63, %v658_v20  ;;  %v660_v16 = vsel %vm473_vm2, %v658_v20, %v656_v63  ;;  %706 = vmatpush1.msra.mxu1 %v669_v14  ;;  %v828_v63 = vld [vmem:[#allocation8 + $0x210] sm:$0xff] }
 0x23f   : > { %v661_v25 = vmul.f32 %v659_v15, %v2006_v23  ;;  %v662_v27 = vmul.f32 %v660_v16, %v2013_v26  ;;  %v646_v23 = vmul.f32 %v2125_v38, %v2042_v42  ;;  %v788_v14 = vld [vmem:[#allocation8 + $0xd0] sm:$0xff]  ;;  %v773_v15 = vld [vmem:[#allocation8 + $0x58] sm:$0xff] }
 0x240   : > { %v780_v20 = vld [vmem:[#allocation8 + $0x90] sm:$0xff] }
 0x241   : > { %707 = vmatprep.subr.mxu1 %v662_v27  ;;  %v650_v28 = vpop.permute.xlu1 %649  ;;  %v630_v31 = vpop.permute.xlu0 %629  ;;  %v772_v16 = vld [vmem:[#allocation8 + $0x50] sm:$0xff]  ;;  %v1013_v27 = vld [vmem:[#allocation8 + $0x7d8] sm:$0xff] }
 0x242   : > { %v651_v18 = vsel %vm453_vm3, %v648_v5, %v650_v28  ;;  %v652_v19 = vsel %vm453_vm3, %v650_v28, %v648_v5  ;;  %708 = vmatpush1.msra.mxu1 %v661_v25  ;;  %v804_v5 = vld [vmem:[#allocation8 + $0x150] sm:$0xff] }
 0x243   : > { %v653_v29 = vmul.f32 %v651_v18, %v2031_v37  ;;  %v654_v30 = vmul.f32 %v652_v19, %v2036_v40  ;;  %v764_v25 = vld [vmem:[#allocation8 + $0x10] sm:$0xff]  ;;  %v1005_v18 = vld [vmem:[#allocation8 + $0x798] sm:$0xff] }
 0x244   : > { %v1012_v28 = vld [vmem:[#allocation8 + $0x7d0] sm:$0xff] }
 0x245   : > { %709 = vmatprep.subr.mxu1 %v654_v30  ;;  %v640_v32 = vpop.permute.xlu1 %639  ;;  %v622_v34 = vpop.permute.xlu0 %621  ;;  %v1004_v19 = vld [vmem:[#allocation8 + $0x790] sm:$0xff] }
 0x246   : > { %v641_v26 = vsel %vm420_vm4, %v638_v21, %v640_v32  ;;  %v642_v8 = vsel %vm420_vm4, %v640_v32, %v638_v21  ;;  %710 = vmatpush1.msra.mxu1 %v653_v29  ;;  %v765_v21 = vld [vmem:[#allocation8 + $0x18] sm:$0xff]  ;;  %v996_v30 = vld [vmem:[#allocation8 + $0x750] sm:$0xff] }
 0x247   : > { %v643_v37 = vmul.f32 %v642_v8, %v2053_v48  ;;  %v644_v40 = vmul.f32 %v641_v26, %v2058_v51  ;;  %711 = vmatprep.subr.mxu1 %v646_v23  ;;  %v997_v29 = vld [vmem:[#allocation8 + $0x758] sm:$0xff]  ;;  %v988_v32 = vld [vmem:[#allocation8 + $0x710] sm:$0xff] }
 0x248   : > { %712 = vmatpush1.msra.mxu1 %v645_v9  ;;  %v981_v23 = vld [vmem:[#allocation8 + $0x6d8] sm:$0xff]  ;;  %v980_v26 = vld [vmem:[#allocation8 + $0x6d0] sm:$0xff] }
 0x249   : > { %v632_v33 = vpop.permute.xlu1 %631  ;;  %713 = vmatprep.subr.mxu1 %v644_v40  ;;  %v614_v44 = vpop.permute.xlu0 %613  ;;  %v973_v8 = vld [vmem:[#allocation8 + $0x698] sm:$0xff]  ;;  %v972_v9 = vld [vmem:[#allocation8 + $0x690] sm:$0xff] }
 0x24a   : > { %v633_v42 = vsel %vm400_vm5, %v630_v31, %v632_v33  ;;  %v634_v38 = vsel %vm400_vm5, %v632_v33, %v630_v31  ;;  %714 = vmatpush1.msra.mxu1 %v643_v37  ;;  %v989_v31 = vld [vmem:[#allocation8 + $0x718] sm:$0xff]  ;;  %v964_v40 = vld [vmem:[#allocation8 + $0x650] sm:$0xff] }
 0x24b   : > { %v635_v36 = vmul.f32 %v634_v38, %v2075_v61  ;;  %v636_v43 = vmul.f32 %v633_v42, %v2078_v62  ;;  %v965_v37 = vld [vmem:[#allocation8 + $0x658] sm:$0xff]  ;;  %v956_v42 = vld [vmem:[#allocation8 + $0x610] sm:$0xff] }
 0x24c   : > { %v957_v33 = vld [vmem:[#allocation8 + $0x618] sm:$0xff] }
 0x24d   : > { %v624_v35 = vpop.permute.xlu1 %623  ;;  %715 = vmatprep.subr.mxu1 %v636_v43  ;;  %v949_v38 = vld [vmem:[#allocation8 + $0x5d8] sm:$0xff]  ;;  %v940_v43 = vld [vmem:[#allocation8 + $0x590] sm:$0xff] }
 0x24e   : > { %v625_v48 = vsel %vm380_vm6, %v622_v34, %v624_v35  ;;  %v626_v51 = vsel %vm380_vm6, %v624_v35, %v622_v34  ;;  %716 = vmatpush1.msra.mxu1 %v635_v36  ;;  %v948_v34 = vld [vmem:[#allocation8 + $0x5d0] sm:$0xff]  ;;  %v941_v36 = vld [vmem:[#allocation8 + $0x598] sm:$0xff] }
 0x24f   : > { %v627_v39 = vmul.f32 %v626_v51, %v2091_v6  ;;  %v628_v41 = vmul.f32 %v625_v48, %v2094_v10  ;;  %v884_v6 = vld [vmem:[#allocation8 + $0x3d0] sm:$0xff]  ;;  %v877_v10 = vld [vmem:[#allocation8 + $0x398] sm:$0xff] }
 0x250   : > { %v933_v35 = vld [vmem:[#allocation8 + $0x558] sm:$0xff]  ;;  %v932_v48 = vld [vmem:[#allocation8 + $0x550] sm:$0xff] }
 0x251   : > { %v616_v45 = vpop.permute.xlu1 %615  ;;  %717 = vmatprep.subr.mxu1 %v628_v41  ;;  %v925_v51 = vld [vmem:[#allocation8 + $0x518] sm:$0xff] }
 0x252   : > { %v617_v61 = vsel %vm360_vm7, %v614_v44, %v616_v45  ;;  %v618_v62 = vsel %vm360_vm7, %v616_v45, %v614_v44  ;;  %718 = vmatpush1.msra.mxu1 %v627_v39  ;;  %v924_v39 = vld [vmem:[#allocation8 + $0x510] sm:$0xff]  ;;  %v917_v41 = vld [vmem:[#allocation8 + $0x4d8] sm:$0xff]  ;;  %v914_v44 = vld [vmem:[#allocation8 + $0x4c0] sm:$0xff] }
 0x253   : > { %v619_v46 = vmul.f32 %v618_v62, %v2107_v22  ;;  %v620_v47 = vmul.f32 %v617_v61, %v2110_v24  ;;  %v860_v22 = vld [vmem:[#allocation8 + $0x310] sm:$0xff]  ;;  %v853_v24 = vld [vmem:[#allocation8 + $0x2d8] sm:$0xff]  ;;  %1075 = vmatpush2.msra.mxu0 %v914_v44  ;;  %v907_v61 = vld [vmem:[#allocation8 + $0x488] sm:$0xff] }
 0x254   : > { %v916_v45 = vld [vmem:[#allocation8 + $0x4d0] sm:$0xff]  ;;  %v909_v62 = vld [vmem:[#allocation8 + $0x498] sm:$0xff]  ;;  %1076 = vmatprep.subr.mxu0 %v907_v61 }
 0x255   : > { %719 = vmatprep.subr.mxu1 %v620_v47  ;;  %v908_v47 = vld [vmem:[#allocation8 + $0x490] sm:$0xff]  ;;  %v801_v61 = vld [vmem:[#allocation8 + $0x138] sm:$0xff] }
 0x256   : > { %720 = vmatpush1.msra.mxu1 %v619_v46  ;;  %v906_v46 = vld [vmem:[#allocation8 + $0x480] sm:$0xff]  ;;  %v808_v44 = vld [vmem:[#allocation8 + $0x170] sm:$0xff] }
 0x257   : > { %1448 = vmatmul.mubr.msk.f32.vlgmr.msra.gmra.mxu1 %vm536_vm8, %v679_v49  ;;  %1089 = vmatprep.subr.mxu1 %v885_v50  ;;  %v899_v49 = vld [vmem:[#allocation8 + $0x448] sm:$0xff]  ;;  %v901_v50 = vld [vmem:[#allocation8 + $0x458] sm:$0xff] }
 0x258   : > { %1090 = vmatpush1.msra.mxu1 %v884_v6  ;;  %1077 = vmatpush2.msra.mxu0 %v906_v46  ;;  %v898_v6 = vld [vmem:[#allocation8 + $0x440] sm:$0xff]  ;;  %v800_v46 = vld [vmem:[#allocation8 + $0x130] sm:$0xff] }
 0x259   : > { %1091 = vmatprep.subr.mxu1 %v877_v10  ;;  %1078 = vmatprep.subr.mxu0 %v899_v49  ;;  %v900_v10 = vld [vmem:[#allocation8 + $0x450] sm:$0xff]  ;;  %v793_v49 = vld [vmem:[#allocation8 + $0xf8] sm:$0xff] }
 0x25a   : > { %1092 = vmatpush1.msra.mxu1 %v876_v52  ;;  %1079 = vmatpush2.msra.mxu0 %v898_v6  ;;  %v891_v52 = vld [vmem:[#allocation8 + $0x408] sm:$0xff]  ;;  %v792_v6 = vld [vmem:[#allocation8 + $0xf0] sm:$0xff] }
 0x25b   : > { %1093 = vmatprep.subr.mxu1 %v869_v53  ;;  %v893_v53 = vld [vmem:[#allocation8 + $0x418] sm:$0xff]  ;;  %1080 = vmatprep.subr.mxu0 %v891_v52 }
 0x25c   : > { %1094 = vmatpush1.msra.mxu1 %v868_v7  ;;  %v890_v7 = vld [vmem:[#allocation8 + $0x400] sm:$0xff]  ;;  %v785_v52 = vld [vmem:[#allocation8 + $0xb8] sm:$0xff] }
 0x25d   : > { %1095 = vmatprep.subr.mxu1 %v861_v54  ;;  %v892_v54 = vld [vmem:[#allocation8 + $0x410] sm:$0xff]  ;;  %1081 = vmatpush2.msra.mxu0 %v890_v7 }
 0x25e   : > { %1096 = vmatpush1.msra.mxu1 %v860_v22  ;;  %v887_v22 = vld [vmem:[#allocation8 + $0x3e8] sm:$0xff]  ;;  %v784_v7 = vld [vmem:[#allocation8 + $0xb0] sm:$0xff] }
 0x25f   : > { %1097 = vmatprep.subr.mxu1 %v853_v24  ;;  %v889_v24 = vld [vmem:[#allocation8 + $0x3f8] sm:$0xff]  ;;  %1160 = vmatprep.subr.mxu0 %v887_v22 }
 0x260   : > { %1098 = vmatpush1.msra.mxu1 %v852_v55  ;;  %v777_v22 = vld [vmem:[#allocation8 + $0x78] sm:$0xff] }
 0x261   : > { %1099 = vmatprep.subr.mxu1 %v845_v56  ;;  %v684_v56 = vpop.permute.xlu0 %683 }
 0x262   : > { %1100 = vmatpush1.msra.mxu1 %v844_v57 }
 0x263   : > { %1101 = vmatprep.subr.mxu1 %v837_v58 }
 0x264   : > { %1102 = vmatpush1.msra.mxu1 %v836_v59 }
 0x265   : > { %1103 = vmatprep.subr.mxu1 %v829_v60 }
 0x266   : > { %1104 = vmatpush1.msra.mxu1 %v828_v63 }
 0x267   : > { %1105 = vmatprep.subr.mxu1 %v821_v0  ;;  %v886_v0 = vld [vmem:[#allocation8 + $0x3e0] sm:$0xff] }
 0x268   : > { %1106 = vmatpush1.msra.mxu1 %v820_v1  ;;  %v888_v1 = vld [vmem:[#allocation8 + $0x3f0] sm:$0xff] }
 0x269   : > { %1107 = vmatprep.subr.mxu1 %v813_v2  ;;  %v879_v2 = vld [vmem:[#allocation8 + $0x3a8] sm:$0xff] }
 0x26a   : > { %1108 = vmatpush1.msra.mxu1 %v812_v3  ;;  %v881_v3 = vld [vmem:[#allocation8 + $0x3b8] sm:$0xff] }
 0x26b   : > { %1109 = vmatprep.subr.mxu1 %v805_v4  ;;  %v878_v4 = vld [vmem:[#allocation8 + $0x3a0] sm:$0xff] }
 0x26c   : > { %1110 = vmatpush1.msra.mxu1 %v804_v5  ;;  %v880_v5 = vld [vmem:[#allocation8 + $0x3b0] sm:$0xff] }
 0x26d   : > { %1111 = vmatprep.subr.mxu1 %v797_v11  ;;  %v871_v11 = vld [vmem:[#allocation8 + $0x368] sm:$0xff] }
 0x26e   : > { %1112 = vmatpush1.msra.mxu1 %v796_v12  ;;  %v873_v12 = vld [vmem:[#allocation8 + $0x378] sm:$0xff] }
 0x26f   : > { %1113 = vmatprep.subr.mxu1 %v789_v13  ;;  %v870_v13 = vld [vmem:[#allocation8 + $0x360] sm:$0xff] }
 0x270   : > { %1114 = vmatpush1.msra.mxu1 %v788_v14  ;;  %v872_v14 = vld [vmem:[#allocation8 + $0x370] sm:$0xff] }
 0x271   : > { %1115 = vmatprep.subr.mxu1 %v781_v17  ;;  %v863_v17 = vld [vmem:[#allocation8 + $0x328] sm:$0xff] }
 0x272   : > { %1116 = vmatpush1.msra.mxu1 %v780_v20  ;;  %v865_v20 = vld [vmem:[#allocation8 + $0x338] sm:$0xff] }
 0x273   : > { %1117 = vmatprep.subr.mxu1 %v773_v15  ;;  %v862_v15 = vld [vmem:[#allocation8 + $0x320] sm:$0xff] }
 0x274   : > { %1118 = vmatpush1.msra.mxu1 %v772_v16  ;;  %v864_v16 = vld [vmem:[#allocation8 + $0x330] sm:$0xff] }
 0x275   : > { %1119 = vmatprep.subr.mxu1 %v765_v21  ;;  %v855_v21 = vld [vmem:[#allocation8 + $0x2e8] sm:$0xff] }
 0x276   : > { %1120 = vmatpush1.msra.mxu1 %v764_v25  ;;  %v857_v25 = vld [vmem:[#allocation8 + $0x2f8] sm:$0xff] }
 0x277   : > { %1121 = vmatprep.subr.mxu1 %v1013_v27  ;;  %v854_v27 = vld [vmem:[#allocation8 + $0x2e0] sm:$0xff] }
 0x278   : > { %1122 = vmatpush2.msra.mxu1 %v1012_v28  ;;  %v856_v28 = vld [vmem:[#allocation8 + $0x2f0] sm:$0xff] }
 0x279   : > { %1123 = vmatprep.subr.mxu1 %v1005_v18  ;;  %v847_v18 = vld [vmem:[#allocation8 + $0x2a8] sm:$0xff] }
 0x27a   : > { %1124 = vmatpush2.msra.mxu1 %v1004_v19  ;;  %v849_v19 = vld [vmem:[#allocation8 + $0x2b8] sm:$0xff] }
 0x27b   : > { %1125 = vmatprep.subr.mxu1 %v997_v29  ;;  %v846_v29 = vld [vmem:[#allocation8 + $0x2a0] sm:$0xff] }
 0x27c   : > { %1126 = vmatpush2.msra.mxu1 %v996_v30  ;;  %v848_v30 = vld [vmem:[#allocation8 + $0x2b0] sm:$0xff] }
 0x27d   : > { %1127 = vmatprep.subr.mxu1 %v989_v31  ;;  %v839_v31 = vld [vmem:[#allocation8 + $0x268] sm:$0xff] }
 0x27e   : > { %1128 = vmatpush2.msra.mxu1 %v988_v32  ;;  %v841_v32 = vld [vmem:[#allocation8 + $0x278] sm:$0xff] }
 0x27f   : > { %1129 = vmatprep.subr.mxu1 %v981_v23  ;;  %v838_v23 = vld [vmem:[#allocation8 + $0x260] sm:$0xff] }
 0x280   : > { %1130 = vmatpush2.msra.mxu1 %v980_v26  ;;  %v840_v26 = vld [vmem:[#allocation8 + $0x270] sm:$0xff] }
 0x281   : > { %1131 = vmatprep.subr.mxu1 %v973_v8  ;;  %v831_v8 = vld [vmem:[#allocation8 + $0x228] sm:$0xff] }
 0x282   : > { %1132 = vmatpush2.msra.mxu1 %v972_v9  ;;  %v833_v9 = vld [vmem:[#allocation8 + $0x238] sm:$0xff] }
 0x283   : > { %1133 = vmatprep.subr.mxu1 %v965_v37  ;;  %v830_v37 = vld [vmem:[#allocation8 + $0x220] sm:$0xff] }
 0x284   : > { %1134 = vmatpush2.msra.mxu1 %v964_v40  ;;  %v832_v40 = vld [vmem:[#allocation8 + $0x230] sm:$0xff] }
 0x285   : > { %1135 = vmatprep.subr.mxu1 %v957_v33  ;;  %v823_v33 = vld [vmem:[#allocation8 + $0x1e8] sm:$0xff] }
 0x286   : > { %1136 = vmatpush2.msra.mxu1 %v956_v42  ;;  %v825_v42 = vld [vmem:[#allocation8 + $0x1f8] sm:$0xff] }
 0x287   : > { %1137 = vmatprep.subr.mxu1 %v949_v38  ;;  %v822_v38 = vld [vmem:[#allocation8 + $0x1e0] sm:$0xff] }
 0x288   : > { %1138 = vmatpush2.msra.mxu1 %v948_v34  ;;  %v824_v34 = vld [vmem:[#allocation8 + $0x1f0] sm:$0xff] }
 0x289   : > { %1139 = vmatprep.subr.mxu1 %v941_v36  ;;  %v815_v36 = vld [vmem:[#allocation8 + $0x1a8] sm:$0xff] }
 0x28a   : > { %1140 = vmatpush2.msra.mxu1 %v940_v43  ;;  %v817_v43 = vld [vmem:[#allocation8 + $0x1b8] sm:$0xff] }
 0x28b   : > { %1141 = vmatprep.subr.mxu1 %v933_v35  ;;  %v814_v35 = vld [vmem:[#allocation8 + $0x1a0] sm:$0xff] }
 0x28c   : > { %1142 = vmatpush2.msra.mxu1 %v932_v48  ;;  %v816_v48 = vld [vmem:[#allocation8 + $0x1b0] sm:$0xff] }
 0x28d   : > { %1143 = vmatprep.subr.mxu1 %v925_v51  ;;  %v807_v51 = vld [vmem:[#allocation8 + $0x168] sm:$0xff] }
 0x28e   : > { %1144 = vmatpush2.msra.mxu1 %v924_v39  ;;  %v809_v39 = vld [vmem:[#allocation8 + $0x178] sm:$0xff] }
 0x28f   : > { %1145 = vmatprep.subr.mxu1 %v917_v41  ;;  %v806_v41 = vld [vmem:[#allocation8 + $0x160] sm:$0xff] }
 0x290   : > { %1146 = vmatpush2.msra.mxu1 %v916_v45  ;;  %v799_v45 = vld [vmem:[#allocation8 + $0x128] sm:$0xff] }
 0x291   : > { %1147 = vmatprep.subr.mxu1 %v909_v62  ;;  %v798_v62 = vld [vmem:[#allocation8 + $0x120] sm:$0xff] }
 0x292   : > { %1148 = vmatpush2.msra.mxu1 %v908_v47  ;;  %v791_v47 = vld [vmem:[#allocation8 + $0xe8] sm:$0xff] }
 0x293   : > { %1149 = vmatprep.subr.mxu1 %v901_v50  ;;  %v790_v50 = vld [vmem:[#allocation8 + $0xe0] sm:$0xff] }
 0x294   : > { %1150 = vmatpush2.msra.mxu1 %v900_v10  ;;  %v783_v10 = vld [vmem:[#allocation8 + $0xa8] sm:$0xff] }
 0x295   : > { %1151 = vmatprep.subr.mxu1 %v893_v53  ;;  %v782_v53 = vld [vmem:[#allocation8 + $0xa0] sm:$0xff] }
 0x296   : > { %1152 = vmatpush2.msra.mxu1 %v892_v54  ;;  %v775_v54 = vld [vmem:[#allocation8 + $0x68] sm:$0xff] }
 0x297   : > { %1231 = vmatprep.subr.mxu1 %v889_v24  ;;  %v774_v24 = vld [vmem:[#allocation8 + $0x60] sm:$0xff] }
 0x317   : > { %v755_v55 = vpop.f32.mrf.mxu1 }
 0x318   : > { %v756_v57 = vadd.f32 %v755_v55, %v684_v56  ;;  %v776_v55 = vld [vmem:[#allocation8 + $0x70] sm:$0xff] }
 0x319   : > { %v757_v58 = vpop.f32.mrf.mxu1 }
 0x31a   : > { %v758_v59 = vadd.f32 %v757_v58, %v684_v56  ;;  %v2211_v63 = vmax.f32 %v756_v57, 0.0  ;;  %v767_v56 = vld [vmem:[#allocation8 + $0x28] sm:$0xff]  ;;  %v769_v57 = vld [vmem:[#allocation8 + $0x38] sm:$0xff]  ;;  %v766_v58 = vld [vmem:[#allocation8 + $0x20] sm:$0xff] }
 0x31c   : > { %v761_v60 = vmax.f32 %v758_v59, 0.0  ;;  %v768_v59 = vld [vmem:[#allocation8 + $0x30] sm:$0xff] }
 0x31e   : > { %1082 = vmatprep.mubr.f32.mxu0 %v761_v60  ;;  %1153 = vmatprep.mubr.f32.mxu1 %v761_v60 }
 0x31f   : > { %1083 = vmatmul.mubr.f32.vlgmr.msra.gmra.mxu0 %v2211_v63  ;;  %1154 = vmatmul.mubr.f32.vlgmr.msra.gmra.mxu1 %v2211_v63 }
 0x320   : > { %1161 = vmatpush1.msra.mxu0 %v886_v0  ;;  %1232 = vmatpush1.msra.mxu1 %v888_v1  ;;  %v1017_v0 = vld [vmem:[#allocation8 + $0x7f8] sm:$0xff]  ;;  %v1014_v1 = vld [vmem:[#allocation8 + $0x7e0] sm:$0xff] }
 0x321   : > { %1162 = vmatprep.subr.mxu0 %v879_v2  ;;  %1224 = vmatprep.mubr.f32.mxu0 %v761_v60  ;;  %v1016_v2 = vld [vmem:[#allocation8 + $0x7f0] sm:$0xff] }
 0x322   : > { %1233 = vmatprep.subr.mxu1 %v881_v3  ;;  %1295 = vmatprep.mubr.f32.mxu1 %v761_v60  ;;  %v1015_v60 = vld [vmem:[#allocation8 + $0x7e8] sm:$0xff] }
 0x323   : > { %1163 = vmatpush1.msra.mxu0 %v878_v4  ;;  %1234 = vmatpush1.msra.mxu1 %v880_v5  ;;  %v1007_v3 = vld [vmem:[#allocation8 + $0x7a8] sm:$0xff]  ;;  %v1009_v4 = vld [vmem:[#allocation8 + $0x7b8] sm:$0xff]  ;;  %v1006_v5 = vld [vmem:[#allocation8 + $0x7a0] sm:$0xff] }
 0x324   : > { %1164 = vmatprep.subr.mxu0 %v871_v11  ;;  %1235 = vmatprep.subr.mxu1 %v873_v12  ;;  %v1008_v11 = vld [vmem:[#allocation8 + $0x7b0] sm:$0xff]  ;;  %v999_v12 = vld [vmem:[#allocation8 + $0x768] sm:$0xff] }
 0x325   : > { %1165 = vmatpush1.msra.mxu0 %v870_v13  ;;  %1236 = vmatpush1.msra.mxu1 %v872_v14  ;;  %v1001_v13 = vld [vmem:[#allocation8 + $0x778] sm:$0xff]  ;;  %v998_v14 = vld [vmem:[#allocation8 + $0x760] sm:$0xff] }
 0x326   : > { %1166 = vmatprep.subr.mxu0 %v863_v17  ;;  %1237 = vmatprep.subr.mxu1 %v865_v20  ;;  %v1000_v17 = vld [vmem:[#allocation8 + $0x770] sm:$0xff]  ;;  %v991_v20 = vld [vmem:[#allocation8 + $0x728] sm:$0xff] }
 0x327   : > { %1167 = vmatpush1.msra.mxu0 %v862_v15  ;;  %1238 = vmatpush1.msra.mxu1 %v864_v16  ;;  %v993_v15 = vld [vmem:[#allocation8 + $0x738] sm:$0xff]  ;;  %v990_v16 = vld [vmem:[#allocation8 + $0x720] sm:$0xff] }
 0x328   : > { %1168 = vmatprep.subr.mxu0 %v855_v21  ;;  %1239 = vmatprep.subr.mxu1 %v857_v25  ;;  %v992_v21 = vld [vmem:[#allocation8 + $0x730] sm:$0xff]  ;;  %v983_v25 = vld [vmem:[#allocation8 + $0x6e8] sm:$0xff] }
 0x329   : > { %1169 = vmatpush1.msra.mxu0 %v854_v27  ;;  %1240 = vmatpush1.msra.mxu1 %v856_v28  ;;  %v985_v27 = vld [vmem:[#allocation8 + $0x6f8] sm:$0xff]  ;;  %v982_v28 = vld [vmem:[#allocation8 + $0x6e0] sm:$0xff] }
 0x32a   : > { %1170 = vmatprep.subr.mxu0 %v847_v18  ;;  %1241 = vmatprep.subr.mxu1 %v849_v19  ;;  %v984_v18 = vld [vmem:[#allocation8 + $0x6f0] sm:$0xff]  ;;  %v975_v19 = vld [vmem:[#allocation8 + $0x6a8] sm:$0xff] }
 0x32b   : > { %1171 = vmatpush1.msra.mxu0 %v846_v29  ;;  %1242 = vmatpush1.msra.mxu1 %v848_v30  ;;  %v977_v29 = vld [vmem:[#allocation8 + $0x6b8] sm:$0xff]  ;;  %v974_v30 = vld [vmem:[#allocation8 + $0x6a0] sm:$0xff] }
 0x32c   : > { %1172 = vmatprep.subr.mxu0 %v839_v31  ;;  %1243 = vmatprep.subr.mxu1 %v841_v32  ;;  %v976_v31 = vld [vmem:[#allocation8 + $0x6b0] sm:$0xff]  ;;  %v967_v32 = vld [vmem:[#allocation8 + $0x668] sm:$0xff] }
 0x32d   : > { %1173 = vmatpush1.msra.mxu0 %v838_v23  ;;  %1244 = vmatpush1.msra.mxu1 %v840_v26  ;;  %v969_v23 = vld [vmem:[#allocation8 + $0x678] sm:$0xff]  ;;  %v966_v26 = vld [vmem:[#allocation8 + $0x660] sm:$0xff] }
 0x32e   : > { %1174 = vmatprep.subr.mxu0 %v831_v8  ;;  %1245 = vmatprep.subr.mxu1 %v833_v9  ;;  %v968_v8 = vld [vmem:[#allocation8 + $0x670] sm:$0xff]  ;;  %v959_v9 = vld [vmem:[#allocation8 + $0x628] sm:$0xff] }
 0x32f   : > { %1175 = vmatpush1.msra.mxu0 %v830_v37  ;;  %1246 = vmatpush1.msra.mxu1 %v832_v40  ;;  %v961_v37 = vld [vmem:[#allocation8 + $0x638] sm:$0xff]  ;;  %v958_v40 = vld [vmem:[#allocation8 + $0x620] sm:$0xff] }
 0x330   : > { %1176 = vmatprep.subr.mxu0 %v823_v33  ;;  %1247 = vmatprep.subr.mxu1 %v825_v42  ;;  %v960_v33 = vld [vmem:[#allocation8 + $0x630] sm:$0xff]  ;;  %v951_v42 = vld [vmem:[#allocation8 + $0x5e8] sm:$0xff] }
 0x331   : > { %1177 = vmatpush1.msra.mxu0 %v822_v38  ;;  %1248 = vmatpush1.msra.mxu1 %v824_v34  ;;  %v953_v38 = vld [vmem:[#allocation8 + $0x5f8] sm:$0xff]  ;;  %v950_v34 = vld [vmem:[#allocation8 + $0x5e0] sm:$0xff] }
 0x332   : > { %1178 = vmatprep.subr.mxu0 %v815_v36  ;;  %1249 = vmatprep.subr.mxu1 %v817_v43  ;;  %v952_v36 = vld [vmem:[#allocation8 + $0x5f0] sm:$0xff]  ;;  %v943_v43 = vld [vmem:[#allocation8 + $0x5a8] sm:$0xff] }
 0x333   : > { %1179 = vmatpush1.msra.mxu0 %v814_v35  ;;  %1250 = vmatpush1.msra.mxu1 %v816_v48  ;;  %v945_v35 = vld [vmem:[#allocation8 + $0x5b8] sm:$0xff]  ;;  %v942_v48 = vld [vmem:[#allocation8 + $0x5a0] sm:$0xff] }
 0x334   : > { %1180 = vmatprep.subr.mxu0 %v807_v51  ;;  %1251 = vmatprep.subr.mxu1 %v809_v39  ;;  %v944_v51 = vld [vmem:[#allocation8 + $0x5b0] sm:$0xff]  ;;  %v935_v39 = vld [vmem:[#allocation8 + $0x568] sm:$0xff] }
 0x335   : > { %1181 = vmatpush1.msra.mxu0 %v806_v41  ;;  %1252 = vmatpush1.msra.mxu1 %v808_v44  ;;  %v937_v41 = vld [vmem:[#allocation8 + $0x578] sm:$0xff]  ;;  %v934_v44 = vld [vmem:[#allocation8 + $0x560] sm:$0xff] }
 0x336   : > { %1182 = vmatprep.subr.mxu0 %v799_v45  ;;  %1253 = vmatprep.subr.mxu1 %v801_v61  ;;  %v936_v45 = vld [vmem:[#allocation8 + $0x570] sm:$0xff]  ;;  %v927_v61 = vld [vmem:[#allocation8 + $0x528] sm:$0xff] }
 0x337   : > { %1183 = vmatpush1.msra.mxu0 %v798_v62  ;;  %1254 = vmatpush1.msra.mxu1 %v800_v46  ;;  %v929_v62 = vld [vmem:[#allocation8 + $0x538] sm:$0xff]  ;;  %v926_v46 = vld [vmem:[#allocation8 + $0x520] sm:$0xff] }
 0x338   : > { %1184 = vmatprep.subr.mxu0 %v791_v47  ;;  %1255 = vmatprep.subr.mxu1 %v793_v49  ;;  %v928_v47 = vld [vmem:[#allocation8 + $0x530] sm:$0xff]  ;;  %v919_v49 = vld [vmem:[#allocation8 + $0x4e8] sm:$0xff] }
 0x339   : > { %1185 = vmatpush1.msra.mxu0 %v790_v50  ;;  %1256 = vmatpush1.msra.mxu1 %v792_v6  ;;  %v921_v50 = vld [vmem:[#allocation8 + $0x4f8] sm:$0xff]  ;;  %v918_v6 = vld [vmem:[#allocation8 + $0x4e0] sm:$0xff] }
 0x33a   : > { %1186 = vmatprep.subr.mxu0 %v783_v10  ;;  %1257 = vmatprep.subr.mxu1 %v785_v52  ;;  %v920_v10 = vld [vmem:[#allocation8 + $0x4f0] sm:$0xff]  ;;  %v911_v52 = vld [vmem:[#allocation8 + $0x4a8] sm:$0xff] }
 0x33b   : > { %1187 = vmatpush1.msra.mxu0 %v782_v53  ;;  %1258 = vmatpush1.msra.mxu1 %v784_v7  ;;  %v913_v53 = vld [vmem:[#allocation8 + $0x4b8] sm:$0xff]  ;;  %v910_v7 = vld [vmem:[#allocation8 + $0x4a0] sm:$0xff] }
 0x33c   : > { %1188 = vmatprep.subr.mxu0 %v775_v54  ;;  %1259 = vmatprep.subr.mxu1 %v777_v22  ;;  %v912_v54 = vld [vmem:[#allocation8 + $0x4b0] sm:$0xff]  ;;  %v903_v22 = vld [vmem:[#allocation8 + $0x468] sm:$0xff] }
 0x33d   : > { %1189 = vmatpush1.msra.mxu0 %v774_v24  ;;  %1260 = vmatpush1.msra.mxu1 %v776_v55  ;;  %v905_v24 = vld [vmem:[#allocation8 + $0x478] sm:$0xff]  ;;  %v902_v55 = vld [vmem:[#allocation8 + $0x460] sm:$0xff] }
 0x33e   : > { %1190 = vmatprep.subr.mxu0 %v767_v56  ;;  %1261 = vmatprep.subr.mxu1 %v769_v57  ;;  %v904_v56 = vld [vmem:[#allocation8 + $0x470] sm:$0xff]  ;;  %v895_v57 = vld [vmem:[#allocation8 + $0x428] sm:$0xff] }
 0x33f   : > { %1191 = vmatpush1.msra.mxu0 %v766_v58  ;;  %1262 = vmatpush1.msra.mxu1 %v768_v59  ;;  %v897_v58 = vld [vmem:[#allocation8 + $0x438] sm:$0xff]  ;;  %v894_v59 = vld [vmem:[#allocation8 + $0x420] sm:$0xff] }
 0x340   : > { %1192 = vmatprep.subr.mxu0 %v1015_v60  ;;  %1263 = vmatprep.subr.mxu1 %v1017_v0  ;;  %v896_v60 = vld [vmem:[#allocation8 + $0x430] sm:$0xff] }
 0x341   : > { %1193 = vmatpush2.msra.mxu0 %v1014_v1  ;;  %1264 = vmatpush2.msra.mxu1 %v1016_v2 }
 0x342   : > { %1194 = vmatprep.subr.mxu0 %v1007_v3  ;;  %1265 = vmatprep.subr.mxu1 %v1009_v4 }
 0x343   : > { %1195 = vmatpush2.msra.mxu0 %v1006_v5  ;;  %1266 = vmatpush2.msra.mxu1 %v1008_v11 }
 0x344   : > { %1196 = vmatprep.subr.mxu0 %v999_v12  ;;  %1267 = vmatprep.subr.mxu1 %v1001_v13 }
 0x345   : > { %1197 = vmatpush2.msra.mxu0 %v998_v14  ;;  %1268 = vmatpush2.msra.mxu1 %v1000_v17 }
 0x346   : > { %1198 = vmatprep.subr.mxu0 %v991_v20  ;;  %1269 = vmatprep.subr.mxu1 %v993_v15 }
 0x347   : > { %1199 = vmatpush2.msra.mxu0 %v990_v16  ;;  %1270 = vmatpush2.msra.mxu1 %v992_v21 }
 0x348   : > { %1200 = vmatprep.subr.mxu0 %v983_v25  ;;  %1271 = vmatprep.subr.mxu1 %v985_v27 }
 0x349   : > { %1201 = vmatpush2.msra.mxu0 %v982_v28  ;;  %1272 = vmatpush2.msra.mxu1 %v984_v18 }
 0x34a   : > { %1202 = vmatprep.subr.mxu0 %v975_v19  ;;  %1273 = vmatprep.subr.mxu1 %v977_v29 }
 0x34b   : > { %1203 = vmatpush2.msra.mxu0 %v974_v30  ;;  %1274 = vmatpush2.msra.mxu1 %v976_v31 }
 0x34c   : > { %1204 = vmatprep.subr.mxu0 %v967_v32  ;;  %1275 = vmatprep.subr.mxu1 %v969_v23 }
 0x34d   : > { %1205 = vmatpush2.msra.mxu0 %v966_v26  ;;  %1276 = vmatpush2.msra.mxu1 %v968_v8 }
 0x34e   : > { %1206 = vmatprep.subr.mxu0 %v959_v9  ;;  %1277 = vmatprep.subr.mxu1 %v961_v37 }
 0x34f   : > { %1207 = vmatpush2.msra.mxu0 %v958_v40  ;;  %1278 = vmatpush2.msra.mxu1 %v960_v33 }
 0x350   : > { %1208 = vmatprep.subr.mxu0 %v951_v42  ;;  %1279 = vmatprep.subr.mxu1 %v953_v38 }
 0x351   : > { %1209 = vmatpush2.msra.mxu0 %v950_v34  ;;  %1280 = vmatpush2.msra.mxu1 %v952_v36 }
 0x352   : > { %1210 = vmatprep.subr.mxu0 %v943_v43  ;;  %1281 = vmatprep.subr.mxu1 %v945_v35 }
 0x353   : > { %1211 = vmatpush2.msra.mxu0 %v942_v48  ;;  %1282 = vmatpush2.msra.mxu1 %v944_v51 }
 0x354   : > { %1212 = vmatprep.subr.mxu0 %v935_v39  ;;  %1283 = vmatprep.subr.mxu1 %v937_v41 }
 0x355   : > { %1213 = vmatpush2.msra.mxu0 %v934_v44  ;;  %1284 = vmatpush2.msra.mxu1 %v936_v45 }
 0x356   : > { %1214 = vmatprep.subr.mxu0 %v927_v61  ;;  %1285 = vmatprep.subr.mxu1 %v929_v62 }
 0x357   : > { %1215 = vmatpush2.msra.mxu0 %v926_v46  ;;  %1286 = vmatpush2.msra.mxu1 %v928_v47 }
 0x358   : > { %1216 = vmatprep.subr.mxu0 %v919_v49  ;;  %1287 = vmatprep.subr.mxu1 %v921_v50 }
 0x359   : > { %1217 = vmatpush2.msra.mxu0 %v918_v6  ;;  %1288 = vmatpush2.msra.mxu1 %v920_v10 }
 0x35a   : > { %1218 = vmatprep.subr.mxu0 %v911_v52  ;;  %1289 = vmatprep.subr.mxu1 %v913_v53 }
 0x35b   : > { %1219 = vmatpush2.msra.mxu0 %v910_v7  ;;  %1290 = vmatpush2.msra.mxu1 %v912_v54 }
 0x35c   : > { %1220 = vmatprep.subr.mxu0 %v903_v22  ;;  %1291 = vmatprep.subr.mxu1 %v905_v24 }
 0x35d   : > { %1221 = vmatpush2.msra.mxu0 %v902_v55  ;;  %1292 = vmatpush2.msra.mxu1 %v904_v56 }
 0x35e   : > { %1222 = vmatprep.subr.mxu0 %v895_v57  ;;  %1293 = vmatprep.subr.mxu1 %v897_v58 }
 0x35f   : > { %1223 = vmatpush2.msra.mxu0 %v894_v59  ;;  %1294 = vmatpush2.msra.mxu1 %v896_v60 }
 0x360   : > { %1225 = vmatmul.mubr.f32.vlgmr.msra.gmra.mxu0 %v2211_v63  ;;  %1296 = vmatmul.mubr.f32.vlgmr.msra.gmra.mxu1 %v2211_v63 }
 0x3df   : > { %v1084_v0 = vpop.f32.mrf.mxu0  ;;  %v1155_v1 = vpop.f32.mrf.mxu1 }
 0x3e0   : > { %1302 = vst [vmem:[%s334_s23] sm:$0xff] %v1084_v0  ;;  %1304 = vst [vmem:[%s334_s23 + $0x10] sm:$0xff] %v1155_v1 }
 0x3e1   : > { %v1086_v2 = vpop.f32.mrf.mxu0  ;;  %v1157_v3 = vpop.f32.mrf.mxu1 }
 0x3e2   : > { %1303 = vst [vmem:[%s334_s23 + $0x8] sm:$0xff] %v1086_v2  ;;  %1305 = vst [vmem:[%s334_s23 + $0x18] sm:$0xff] %v1157_v3 }
 0x420   : > { %v1226_v4 = vpop.f32.mrf.mxu0  ;;  %v1297_v5 = vpop.f32.mrf.mxu1 }
 0x421   : > { %1306 = vst [vmem:[%s334_s23 + $0x20] sm:$0xff] %v1226_v4  ;;  %1308 = vst [vmem:[%s334_s23 + $0x30] sm:$0xff] %v1297_v5 }
 0x422   : > { %v1228_v63 = vpop.f32.mrf.mxu0  ;;  %v1299_v11 = vpop.f32.mrf.mxu1 }
 0x423   : > { %1307 = vst [vmem:[%s334_s23 + $0x28] sm:$0xff] %v1228_v63  ;;  %1309 = vst [vmem:[%s334_s23 + $0x38] sm:$0xff] %v1299_v11 }
 0x424   : > { %1665 = shalt.err (!%p1662_p3)
}
 0x425   : > { %s1666_s17 = scalar_lea.hbm %s2222_s2, 1024  ;;  %s1670_s4 = scalar_lea.hbm %s2272_s7, 2048 }
 0x426   : > { %p1667_p4 = scmp.ne.s32.totalorder %s2222_s2, %s1666_s17  ;;  %p1671_p11 = scmp.lt.s32.totalorder %s2222_s2, %s2272_s7 }
 0x427   : > { %p1672_p6 = scmp.lt.s32.totalorder %s1670_s4, %s1666_s17 }
 0x428   : > { %p1668_p2 = pnand %p1667_p4, %p2294_p5 }
 0x429   : > { %p1673_p8 = por %p1672_p6, %p1671_p11 }
 0x42a   : > { %p1669_p9 = pneg %p1668_p2 }
 0x42c   : > { %p1674_p12 = pnand %p1673_p8, %p1669_p9 }
 0x42e   : > { %1677 = shalt.err (!%p1674_p12)
}
 0x42f   : > { %1470 = dma.vmem_to_hbm [thread:$0]  (%p2294_p5), %s2224_s11, 1024, %s2222_s2, %s1311_s28  }
 0x430 PF: > { %s1337_s23 = sand.u32 1, %s1712_s24   ;;  %p2295_p7 = scmp.ne.s32.totalorder %s2280_s8, 0 }
 0x431   : > { %p2296_p10 = scmp.ge.s32.totalorder %s1724_s27, 2  ;;  %s1338_s10 = scalar_lea.sflag [#allocation4], %s1337_s23 }
 0x433   : > { %p1487_p13 = pnand %p2296_p10, %p2295_p7 }
 0x435   : > { %p1488_p0 = pneg %p1487_p13 }
 0x437   : > { %1707 = dma.done.wait (%p1488_p0), %s1338_s10, 1024  }
 0x438   : > { %1709 = vsyncadd (%p1488_p0), %s1338_s10, 4294966272  ;;  %p22_p1 = scmp.ge.s32.totalorder %s1870_s13, 4   ;;  %s2297_s24 = smov %s1716_s25 }
 0x439   : > { %s2298_s25 = smov %s1720_s26  ;;  %s2299_s26 = smov %s1880_s18 }
 0x43a   : > { %s2300_s27 = smov %s1870_s13  ;;  %24 = sbr.rel (!%p22_p1) target bundleno = 10 (0xa), region = 113 }
 0x43f   :  { %1343 = vsyncpa [#allocation3], 1 }
 0x440   :  { %1345 = vsyncpa [#allocation3 + $0x1], 1 }
 0x441   :  { %1346 = vsyncpa [#allocation6], 1 }
 0x442   :  { %1347 = vsyncpa [#allocation9], 1 }
 0x443   :  { %1348 = vsyncpa [#allocation4], 1 }
 0x444   :  { %1350 = vsyncpa [#allocation4 + $0x1], 1 }

</bundles_post_ra>
